<compile_context>
chip_gen: v7x
topology: tpu7x:2x2x1
jax: 0.10.0
libtpu: 0.0.40
codegen_flags: <defaults>
</compile_context>

<pallas_src>
import functools

import jax
import jax.numpy as jnp
from jax.experimental import pallas as pl
from jax.experimental.pallas import tpu as pltpu


# ----------------------------- Pallas kernels -----------------------------

def _bn_stats_kernel(x_ref, sum_ref, sumsq_ref):
    """Row-tiled sum / sum-of-squares over rows of an (R, W*C) slab.

    Only used for the very first BN input; later stats come fused out of the
    conv kernel.  Accumulators are resident (same block every step).
    """
    @pl.when(pl.program_id(0) == 0)
    def _():
        sum_ref[...] = jnp.zeros_like(sum_ref)
        sumsq_ref[...] = jnp.zeros_like(sumsq_ref)

    x = x_ref[...].astype(jnp.float32)
    sum_ref[...] += jnp.sum(x, axis=0, keepdims=True)
    sumsq_ref[...] += jnp.sum(x * x, axis=0, keepdims=True)


def _conv_bn_relu_kernel(x_ref, scale_ref, shift_ref, wband_ref, bias_ref,
                         *refs, H, W, C, K, k, k_, add_residual):
    """Fused  relu(bn(x)) -> ZeroPad2d -> KxK conv (+bias) [+ residual]  for
    one image, plus the per-image stats of the produced output (the next BN's
    input), all in a single pass over the data.

    x_ref     : (1, H, W*C)         raw (pre-BN) activation, channel in lanes
    scale_ref : (1, W*C)            gamma*rsqrt(var+eps), tiled over W
    shift_ref : (1, W*C)            beta - mean*scale,    tiled over W
    wband_ref : (K, Wp*C, W*C)      banded conv weight (x-shift folded in)
    bias_ref  : (1, W*C)            conv bias tiled over W
    res_ref   : (1, H, W*C)         optional residual (skip connection)
    o_ref     : (1, H, W*C)         output block
    osum_ref  : (1, 1, W*C)         per-image sum  over H of the output
    osq_ref   : (1, 1, W*C)         per-image sumsq over H of the output
    pad_ref   : VMEM (Hp, Wp*C) f32 zero-padded activation scratch
    """
    if add_residual:
        res_ref, o_ref, osum_ref, osq_ref, pad_ref = refs
    else:
        o_ref, osum_ref, osq_ref, pad_ref = refs
        res_ref = None

    Hp, WpC = pad_ref.shape

    # ---- fused BatchNorm (precomputed per-channel affine) + ReLU ----
    x = x_ref[0].astype(jnp.float32)                               # (H, W*C)
    act = jnp.maximum(x * scale_ref[...] + shift_ref[...], 0.0)

    # ---- ZeroPad2d fused: zero only the thin border strips, write interior.
    # (Scratch is fully rewritten every grid step -> safe under megacore.)
    if k > 0:
        pad_ref[0:k, :] = jnp.zeros((k, WpC), jnp.float32)          # top rows
        pad_ref[k:k + H, 0:k * C] = jnp.zeros((H, k * C), jnp.float32)   # left
    if k_ > 0:
        pad_ref[k + H:Hp, :] = jnp.zeros((k_, WpC), jnp.float32)    # bottom
        pad_ref[k:k + H, (k + W) * C:WpC] = jnp.zeros((H, k_ * C),
                                                      jnp.float32)  # right
    pad_ref[k:k + H, k * C:(k + W) * C] = act                       # interior

    # ---- K contiguous-row matmuls against the banded weight.  The x-shift
    # lives inside the weight, so there are no strided tap slices and the
    # accumulation happens in registers (no scratch read-modify-write).
    out = jnp.dot(pad_ref[0:H, :], wband_ref[0],
                  preferred_element_type=jnp.float32)               # (H, W*C)
    for dy in range(1, K):
        out = out + jnp.dot(pad_ref[dy:dy + H, :], wband_ref[dy],
                            preferred_element_type=jnp.float32)

    out = out + bias_ref[...]
    if res_ref is not None:
        out = out + res_ref[0].astype(jnp.float32)                  # skip add

    o_ref[0] = out.astype(o_ref.dtype)
    # fused stats of the tensor just produced (input of the next BatchNorm);
    # the cheap reduction over the W groups happens in XLA glue.
    osum_ref[0] = jnp.sum(out, axis=0, keepdims=True)               # (1, W*C)
    osq_ref[0] = jnp.sum(out * out, axis=0, keepdims=True)


# ----------------------------- pallas_call wrappers -----------------------------

def bn_channel_sums(x2d, row_tile=512):
    """Sum / sum-of-squares over the rows of a (R, L) slab -> two (1, L)."""
    R, L = x2d.shape
    tr = min(row_tile, ((R + 7) // 8) * 8)
    rp = pl.cdiv(R, tr) * tr
    if rp != R:
        # zero rows do not change sum / sumsq; we divide by the true count.
        x2d = jnp.pad(x2d, ((0, rp - R), (0, 0)))
    return pl.pallas_call(
        _bn_stats_kernel,
        grid=(rp // tr,),
        in_specs=[pl.BlockSpec((tr, L), lambda i: (i, 0))],
        out_specs=[pl.BlockSpec((1, L), lambda i: (0, 0)),
                   pl.BlockSpec((1, L), lambda i: (0, 0))],
        out_shape=(jax.ShapeDtypeStruct((1, L), jnp.float32),
                   jax.ShapeDtypeStruct((1, L), jnp.float32)),
        compiler_params=pltpu.CompilerParams(
            dimension_semantics=("arbitrary",)),
    )(x2d)


def conv_bn_relu(x, scale_wc, shift_wc, wband, bias_wc, *,
                 H, W, C, K, k, k_, residual=None):
    """Fused relu(bn(x)) -> pad -> conv (+ residual) + output stats, per image."""
    N = x.shape[0]
    WC = W * C
    Hp, Wp = H + k + k_, W + k + k_
    add_residual = residual is not None
    kernel = functools.partial(_conv_bn_relu_kernel, H=H, W=W, C=C, K=K,
                               k=k, k_=k_, add_residual=add_residual)

    in_specs = [
        pl.BlockSpec((1, H, WC), lambda n: (n, 0, 0)),
        pl.BlockSpec((1, WC), lambda n: (0, 0)),
        pl.BlockSpec((1, WC), lambda n: (0, 0)),
        pl.BlockSpec((K, Wp * C, WC), lambda n: (0, 0, 0)),
        pl.BlockSpec((1, WC), lambda n: (0, 0)),
    ]
    args = [x, scale_wc, shift_wc, wband, bias_wc]
    if add_residual:
        in_specs.append(pl.BlockSpec((1, H, WC), lambda n: (n, 0, 0)))
        args.append(residual)

    out_shape = (jax.ShapeDtypeStruct((N, H, WC), x.dtype),
                 jax.ShapeDtypeStruct((N, 1, WC), jnp.float32),
                 jax.ShapeDtypeStruct((N, 1, WC), jnp.float32))
    out_specs = (pl.BlockSpec((1, H, WC), lambda n: (n, 0, 0)),
                 pl.BlockSpec((1, 1, WC), lambda n: (n, 0, 0)),
                 pl.BlockSpec((1, 1, WC), lambda n: (n, 0, 0)))

    return pl.pallas_call(
        kernel,
        grid=(N,),
        in_specs=in_specs,
        out_specs=out_specs,
        out_shape=out_shape,
        scratch_shapes=[pltpu.VMEM((Hp, Wp * C), jnp.float32)],
        compiler_params=pltpu.CompilerParams(
            dimension_semantics=("parallel",)),
    )(*args)


# ----------------------------- parameter prepare (one-time) -----------------------------

def prepare_params(params, *, W, K, k, k_):
    """Hoisted, one-time preprocessing: build the banded conv weight and the
    W-tiled bias for each layer.

    Banded weight: band[dy, xp*C + ci, x*Cout + co] = w[co, ci, dy, xp - x]
    (zero when xp - x is outside [0, K)), so that a single matmul of a padded
    row block (H, Wp*C) with band[dy] performs all dx taps at once.
    """
    prepared = []
    Wp = W + k + k_
    for (gamma, beta, w, b) in params:
        Cout, Cin, _, _ = w.shape
        wt = jnp.transpose(w, (2, 3, 1, 0)).astype(jnp.float32)     # (K,K,Ci,Co)
        xp = jnp.arange(Wp)[None, :, None]
        xx = jnp.arange(W)[None, None, :]
        dx = jnp.arange(K)[:, None, None]
        S = (xp == xx + dx).astype(jnp.float32)                     # (K, Wp, W)
        band = jnp.einsum('dpx,edio->epixo', S, wt)                 # (K,Wp,Ci,W,Co)
        band = band.reshape(K, Wp * Cin, W * Cout)
        bias_wc = jnp.tile(b.astype(jnp.float32), W).reshape(1, W * Cout)
        prepared.append((gamma.astype(jnp.float32),
                         beta.astype(jnp.float32), band, bias_wc))
    return prepared


def _finish_stats(s_wc, ss_wc, count, gamma, beta, W, C, eps):
    """Reduce fused (…, W*C) partial sums to per-channel BN scale/shift,
    tiled over W for direct lane-wise application inside the kernel."""
    s = s_wc.reshape(-1, W, C).sum(axis=(0, 1))
    ss = ss_wc.reshape(-1, W, C).sum(axis=(0, 1))
    mean = s / count
    # one-pass E[x^2]-E[x]^2 in f32 (fine at this tolerance; a shifted two-pass
    # form would be safer when |mean| >> std).
    var = jnp.maximum(ss / count - mean * mean, 0.0)
    scale = gamma * jax.lax.rsqrt(var + eps)
    shift = beta - mean * scale
    return (jnp.tile(scale, W).reshape(1, W * C),
            jnp.tile(shift, W).reshape(1, W * C))


# ----------------------------- ResNet forward -----------------------------

def resnet_forward(x_nchw, prepared, *, H, W, C, K, k, k_, eps=1e-5):
    """prepared: list (one per Res2d layer) of (gamma, beta, wband, bias_wc)."""
    N = x_nchw.shape[0]
    WC = W * C
    count = N * H * W

    # NCHW -> (N, H, W*C): channels packed into lanes, compact in HBM.
    x = jnp.transpose(x_nchw, (0, 2, 3, 1)).reshape(N, H, WC)

    # standalone stats pass only for the very first BN input; every later BN
    # gets its stats fused out of the conv kernel that produced its input.
    xsum, xsq = bn_channel_sums(x.reshape(N * H, WC))

    for (gamma, beta, wband, bias_wc) in prepared:
        sc, sh = _finish_stats(xsum, xsq, count, gamma, beta, W, C, eps)
        h, hsum, hsq = conv_bn_relu(x, sc, sh, wband, bias_wc,
                                    H=H, W=W, C=C, K=K, k=k, k_=k_)       # conv1
        sc, sh = _finish_stats(hsum, hsq, count, gamma, beta, W, C, eps)  # bn reused
        x, xsum, xsq = conv_bn_relu(h, sc, sh, wband, bias_wc,
                                    H=H, W=W, C=C, K=K, k=k, k_=k_,
                                    residual=x)                           # conv1 + skip

    return jnp.transpose(x.reshape(N, H, W, C), (0, 3, 1, 2))


# ----------------------------- pure-JAX reference -----------------------------

def resnet_reference(x, params, kernel_size=3):
    K = kernel_size
    k = (K - 1) // 2
    k_ = k + 1 if K % 2 == 0 else k

    def bnrelu(v, g, be):
        m = v.mean(axis=(0, 2, 3), keepdims=True)
        var = jnp.square(v - m).mean(axis=(0, 2, 3), keepdims=True)
        y = (v - m) / jnp.sqrt(var + 1e-5) * g.reshape(1, -1, 1, 1) + be.reshape(1, -1, 1, 1)
        return jnp.maximum(y, 0.0)

    def conv(v, w, bias):
        vp = jnp.pad(v, ((0, 0), (0, 0), (k, k_), (k, k_)))
        o = jax.lax.conv_general_dilated(
            vp, w, window_strides=(1, 1), padding="VALID",
            dimension_numbers=("NCHW", "OIHW", "NCHW"))
        return o + bias.reshape(1, -1, 1, 1)

    for (g, be, w, bias) in params:
        h = conv(bnrelu(x, g, be), w, bias)
        h = conv(bnrelu(h, g, be), w, bias)
        x = h + x
    return x


# ----------------------------- main -----------------------------

if __name__ == "__main__":
    N, C, H, W = 2, 4, 16, 16
    K = 3
    depth = 2
    k = (K - 1) // 2
    k_ = k + 1 if K % 2 == 0 else k

    key = jax.random.PRNGKey(0)
    key, kx = jax.random.split(key)
    x = jax.random.normal(kx, (N, C, H, W), jnp.float32)

    params = []
    for _ in range(depth):
        key, kg, kb, kw, kc = jax.random.split(key, 5)
        gamma = 1.0 + 0.1 * jax.random.normal(kg, (C,), jnp.float32)
        beta = 0.1 * jax.random.normal(kb, (C,), jnp.float32)
        conv_w = 0.1 * jax.random.normal(kw, (C, C, K, K), jnp.float32)  # OIHW
        conv_b = 0.1 * jax.random.normal(kc, (C,), jnp.float32)
        params.append((gamma, beta, conv_w, conv_b))

    # one-time parameter preprocessing, hoisted out of the per-call path
    prepared = prepare_params(params, W=W, K=K, k=k, k_=k_)

    fwd = jax.jit(functools.partial(resnet_forward,
                                    H=H, W=W, C=C, K=K, k=k, k_=k_))
    out = jax.block_until_ready(fwd(x, prepared))

    ref = resnet_reference(x, params, kernel_size=K)
    assert out.shape == (N, C, H, W)
    assert bool(jnp.allclose(out, ref, atol=1e-3, rtol=1e-3)), "mismatch vs reference"

    print("KERNEL_OK")
</pallas_src>

<mosaic_0001>
module attributes {stable_mosaic.version = 11 : i64} {
  func.func @_bn_stats_kernel(%arg0: i32, %arg1: memref<32x64xf32, #tpu.memory_space<vmem>>, %arg2: memref<1x64xf32, #tpu.memory_space<vmem>>, %arg3: memref<1x64xf32, #tpu.memory_space<vmem>>) attributes {dimension_semantics = [#tpu.dimension_semantics<arbitrary>], iteration_bounds = array<i64: 1>, scalar_prefetch = 0 : i64, scratch_operands = 0 : i64, tpu.core_type = #tpu.core_type<tc>, window_params = [{transform_indices = @transform_0, window_bounds = array<i64: 32, 64>}, {pipeline_mode = #tpu.pipeline_mode<synchronous>, transform_indices = @transform_1, window_bounds = array<i64: 1, 64>}, {pipeline_mode = #tpu.pipeline_mode<synchronous>, transform_indices = @transform_2, window_bounds = array<i64: 1, 64>}]} {
    %c0_i32 = arith.constant 0 : i32
    %0 = arith.cmpi eq, %arg0, %c0_i32 : i32
    %1 = arith.extui %0 : i1 to i32
    %c0_i32_0 = arith.constant 0 : i32
    %2 = arith.cmpi ne, %1, %c0_i32_0 : i32
    scf.if %2 {
      %cst_11 = arith.constant 0.000000e+00 : f32
      %15 = vector.broadcast %cst_11 : f32 to vector<1x64xf32>
      %c0_12 = arith.constant 0 : index
      %c0_13 = arith.constant 0 : index
      %16 = vector.load %arg2[%c0_12, %c0_13] : memref<1x64xf32, #tpu.memory_space<vmem>>, vector<1x64xf32>
      tpu.vector_store %arg2[%c0_12, %c0_13], %15 {strides = array<i32>} : memref<1x64xf32, #tpu.memory_space<vmem>>, vector<1x64xf32>,
      %cst_14 = arith.constant 0.000000e+00 : f32
      %17 = vector.broadcast %cst_14 : f32 to vector<1x64xf32>
      %c0_15 = arith.constant 0 : index
      %c0_16 = arith.constant 0 : index
      %18 = vector.load %arg3[%c0_15, %c0_16] : memref<1x64xf32, #tpu.memory_space<vmem>>, vector<1x64xf32>
      tpu.vector_store %arg3[%c0_15, %c0_16], %17 {strides = array<i32>} : memref<1x64xf32, #tpu.memory_space<vmem>>, vector<1x64xf32>,
    } else {
    }
    %c0 = arith.constant 0 : index
    %c0_1 = arith.constant 0 : index
    %3 = vector.load %arg1[%c0, %c0_1] : memref<32x64xf32, #tpu.memory_space<vmem>>, vector<32x64xf32>
    %c0_2 = arith.constant 0 : index
    %c0_3 = arith.constant 0 : index
    %4 = vector.load %arg2[%c0_2, %c0_3] : memref<1x64xf32, #tpu.memory_space<vmem>>, vector<1x64xf32>
    %cst = arith.constant dense<0.000000e+00> : vector<64xf32>
    %5 = vector.multi_reduction <add>, %3, %cst [0] : vector<32x64xf32> to vector<64xf32>
    %6 = vector.shape_cast %5 : vector<64xf32> to vector<1x64xf32>
    %7 = arith.addf %4, %6 : vector<1x64xf32>
    %c0_4 = arith.constant 0 : index
    %c0_5 = arith.constant 0 : index
    %8 = vector.load %arg2[%c0_4, %c0_5] : memref<1x64xf32, #tpu.memory_space<vmem>>, vector<1x64xf32>
    tpu.vector_store %arg2[%c0_4, %c0_5], %7 {strides = array<i32>} : memref<1x64xf32, #tpu.memory_space<vmem>>, vector<1x64xf32>,
    %c0_6 = arith.constant 0 : index
    %c0_7 = arith.constant 0 : index
    %9 = vector.load %arg3[%c0_6, %c0_7] : memref<1x64xf32, #tpu.memory_space<vmem>>, vector<1x64xf32>
    %10 = arith.mulf %3, %3 : vector<32x64xf32>
    %cst_8 = arith.constant dense<0.000000e+00> : vector<64xf32>
    %11 = vector.multi_reduction <add>, %10, %cst_8 [0] : vector<32x64xf32> to vector<64xf32>
    %12 = vector.shape_cast %11 : vector<64xf32> to vector<1x64xf32>
    %13 = arith.addf %9, %12 : vector<1x64xf32>
    %c0_9 = arith.constant 0 : index
    %c0_10 = arith.constant 0 : index
    %14 = vector.load %arg3[%c0_9, %c0_10] : memref<1x64xf32, #tpu.memory_space<vmem>>, vector<1x64xf32>
    tpu.vector_store %arg3[%c0_9, %c0_10], %13 {strides = array<i32>} : memref<1x64xf32, #tpu.memory_space<vmem>>, vector<1x64xf32>,
    return
  }
  func.func @transform_0(%arg0: i32) -> (i32, i32) {
    %c0_i32 = arith.constant 0 : i32
    %c0_i32_0 = arith.constant 0 : i32
    return %arg0, %c0_i32 : i32, i32
  }
  func.func @transform_1(%arg0: i32) -> (i32, i32) {
    %c0_i32 = arith.constant 0 : i32
    %c0_i32_0 = arith.constant 0 : i32
    %c0_i32_1 = arith.constant 0 : i32
    return %c0_i32, %c0_i32_0 : i32, i32
  }
  func.func @transform_2(%arg0: i32) -> (i32, i32) {
    %c0_i32 = arith.constant 0 : i32
    %c0_i32_0 = arith.constant 0 : i32
    %c0_i32_1 = arith.constant 0 : i32
    return %c0_i32, %c0_i32_0 : i32, i32
  }
}

module attributes {stable_mosaic.version = 11 : i64} {
  func.func @_conv_bn_relu_kernel(%arg0: i32, %arg1: memref<1x16x64xf32, #tpu.memory_space<vmem>>, %arg2: memref<1x64xf32, #tpu.memory_space<vmem>>, %arg3: memref<1x64xf32, #tpu.memory_space<vmem>>, %arg4: memref<3x72x64xf32, #tpu.memory_space<vmem>>, %arg5: memref<1x64xf32, #tpu.memory_space<vmem>>, %arg6: memref<1x16x64xf32, #tpu.memory_space<vmem>>, %arg7: memref<1x1x64xf32, #tpu.memory_space<vmem>>, %arg8: memref<1x1x64xf32, #tpu.memory_space<vmem>>, %arg9: memref<18x72xf32, #tpu.memory_space<vmem>>) attributes {dimension_semantics = [#tpu.dimension_semantics<parallel>], iteration_bounds = array<i64: 2>, scalar_prefetch = 0 : i64, scratch_operands = 1 : i64, tpu.core_type = #tpu.core_type<tc>, window_params = [{transform_indices = @transform_0, window_bounds = array<i64: 1, 16, 64>}, {pipeline_mode = #tpu.pipeline_mode<synchronous>, transform_indices = @transform_1, window_bounds = array<i64: 1, 64>}, {pipeline_mode = #tpu.pipeline_mode<synchronous>, transform_indices = @transform_2, window_bounds = array<i64: 1, 64>}, {pipeline_mode = #tpu.pipeline_mode<synchronous>, transform_indices = @transform_3, window_bounds = array<i64: 3, 72, 64>}, {pipeline_mode = #tpu.pipeline_mode<synchronous>, transform_indices = @transform_4, window_bounds = array<i64: 1, 64>}, {transform_indices = @transform_5, window_bounds = array<i64: 1, 16, 64>}, {transform_indices = @transform_6, window_bounds = array<i64: 1, 1, 64>}, {transform_indices = @transform_7, window_bounds = array<i64: 1, 1, 64>}]} {
    %c0 = arith.constant 0 : index
    %c0_0 = arith.constant 0 : index
    %c0_1 = arith.constant 0 : index
    %0 = vector.load %arg1[%c0, %c0_0, %c0_1] : memref<1x16x64xf32, #tpu.memory_space<vmem>>, vector<1x16x64xf32>
    %1 = vector.shape_cast %0 : vector<1x16x64xf32> to vector<16x64xf32>
    %c0_2 = arith.constant 0 : index
    %c0_3 = arith.constant 0 : index
    %2 = vector.load %arg2[%c0_2, %c0_3] : memref<1x64xf32, #tpu.memory_space<vmem>>, vector<1x64xf32>
    %3 = vector.broadcast %2 : vector<1x64xf32> to vector<16x64xf32>
    %4 = arith.mulf %1, %3 : vector<16x64xf32>
    %c0_4 = arith.constant 0 : index
    %c0_5 = arith.constant 0 : index
    %5 = vector.load %arg3[%c0_4, %c0_5] : memref<1x64xf32, #tpu.memory_space<vmem>>, vector<1x64xf32>
    %6 = vector.broadcast %5 : vector<1x64xf32> to vector<16x64xf32>
    %7 = arith.addf %4, %6 : vector<16x64xf32>
    %cst = arith.constant 0.000000e+00 : f32
    %8 = vector.broadcast %cst : f32 to vector<16x64xf32>
    %9 = arith.maximumf %7, %8 : vector<16x64xf32>
    %cst_6 = arith.constant 0.000000e+00 : f32
    %10 = vector.broadcast %cst_6 : f32 to vector<1x72xf32>
    %c0_7 = arith.constant 0 : index
    %c0_8 = arith.constant 0 : index
    %11 = vector.load %arg9[%c0_7, %c0_8] : memref<18x72xf32, #tpu.memory_space<vmem>>, vector<1x72xf32>
    tpu.vector_store %arg9[%c0_7, %c0_8], %10 {strides = array<i32>} : memref<18x72xf32, #tpu.memory_space<vmem>>, vector<1x72xf32>,
    %cst_9 = arith.constant 0.000000e+00 : f32
    %12 = vector.broadcast %cst_9 : f32 to vector<16x4xf32>
    %c1 = arith.constant 1 : index
    %c0_10 = arith.constant 0 : index
    %13 = vector.load %arg9[%c1, %c0_10] : memref<18x72xf32, #tpu.memory_space<vmem>>, vector<16x4xf32>
    tpu.vector_store %arg9[%c1, %c0_10], %12 {strides = array<i32>} : memref<18x72xf32, #tpu.memory_space<vmem>>, vector<16x4xf32>,
    %cst_11 = arith.constant 0.000000e+00 : f32
    %14 = vector.broadcast %cst_11 : f32 to vector<1x72xf32>
    %c17 = arith.constant 17 : index
    %c0_12 = arith.constant 0 : index
    %15 = vector.load %arg9[%c17, %c0_12] : memref<18x72xf32, #tpu.memory_space<vmem>>, vector<1x72xf32>
    tpu.vector_store %arg9[%c17, %c0_12], %14 {strides = array<i32>} : memref<18x72xf32, #tpu.memory_space<vmem>>, vector<1x72xf32>,
    %cst_13 = arith.constant 0.000000e+00 : f32
    %16 = vector.broadcast %cst_13 : f32 to vector<16x4xf32>
    %c1_14 = arith.constant 1 : index
    %c68 = arith.constant 68 : index
    %17 = vector.load %arg9[%c1_14, %c68] : memref<18x72xf32, #tpu.memory_space<vmem>>, vector<16x4xf32>
    tpu.vector_store %arg9[%c1_14, %c68], %16 {strides = array<i32>} : memref<18x72xf32, #tpu.memory_space<vmem>>, vector<16x4xf32>,
    %c1_15 = arith.constant 1 : index
    %c4 = arith.constant 4 : index
    %18 = vector.load %arg9[%c1_15, %c4] : memref<18x72xf32, #tpu.memory_space<vmem>>, vector<16x64xf32>
    tpu.vector_store %arg9[%c1_15, %c4], %9 {strides = array<i32>} : memref<18x72xf32, #tpu.memory_space<vmem>>, vector<16x64xf32>,
    %c0_16 = arith.constant 0 : index
    %c0_17 = arith.constant 0 : index
    %19 = vector.load %arg9[%c0_16, %c0_17] : memref<18x72xf32, #tpu.memory_space<vmem>>, vector<16x72xf32>
    %c0_18 = arith.constant 0 : index
    %c0_19 = arith.constant 0 : index
    %c0_20 = arith.constant 0 : index
    %20 = vector.load %arg4[%c0_18, %c0_19, %c0_20] : memref<3x72x64xf32, #tpu.memory_space<vmem>>, vector<1x72x64xf32>
    %21 = vector.shape_cast %20 : vector<1x72x64xf32> to vector<72x64xf32>
    %cst_21 = arith.constant dense<0.000000e+00> : vector<16x64xf32>
    %22 = tpu.matmul %19, %21, %cst_21 {dimension_numbers = #tpu.dot_dimension_numbers<[1], [0], [0], [1], [0, 0, 1, 1], [], []>} : vector<16x72xf32>, vector<72x64xf32>, vector<16x64xf32> -> vector<16x64xf32>
    %c1_22 = arith.constant 1 : index
    %c0_23 = arith.constant 0 : index
    %23 = vector.load %arg9[%c1_22, %c0_23] : memref<18x72xf32, #tpu.memory_space<vmem>>, vector<16x72xf32>
    %c1_24 = arith.constant 1 : index
    %c0_25 = arith.constant 0 : index
    %c0_26 = arith.constant 0 : index
    %24 = vector.load %arg4[%c1_24, %c0_25, %c0_26] : memref<3x72x64xf32, #tpu.memory_space<vmem>>, vector<1x72x64xf32>
    %25 = vector.shape_cast %24 : vector<1x72x64xf32> to vector<72x64xf32>
    %cst_27 = arith.constant dense<0.000000e+00> : vector<16x64xf32>
    %26 = tpu.matmul %23, %25, %cst_27 {dimension_numbers = #tpu.dot_dimension_numbers<[1], [0], [0], [1], [0, 0, 1, 1], [], []>} : vector<16x72xf32>, vector<72x64xf32>, vector<16x64xf32> -> vector<16x64xf32>
    %27 = arith.addf %22, %26 : vector<16x64xf32>
    %c2 = arith.constant 2 : index
    %c0_28 = arith.constant 0 : index
    %28 = vector.load %arg9[%c2, %c0_28] : memref<18x72xf32, #tpu.memory_space<vmem>>, vector<16x72xf32>
    %c2_29 = arith.constant 2 : index
    %c0_30 = arith.constant 0 : index
    %c0_31 = arith.constant 0 : index
    %29 = vector.load %arg4[%c2_29, %c0_30, %c0_31] : memref<3x72x64xf32, #tpu.memory_space<vmem>>, vector<1x72x64xf32>
    %30 = vector.shape_cast %29 : vector<1x72x64xf32> to vector<72x64xf32>
    %cst_32 = arith.constant dense<0.000000e+00> : vector<16x64xf32>
    %31 = tpu.matmul %28, %30, %cst_32 {dimension_numbers = #tpu.dot_dimension_numbers<[1], [0], [0], [1], [0, 0, 1, 1], [], []>} : vector<16x72xf32>, vector<72x64xf32>, vector<16x64xf32> -> vector<16x64xf32>
    %32 = arith.addf %27, %31 : vector<16x64xf32>
    %c0_33 = arith.constant 0 : index
    %c0_34 = arith.constant 0 : index
    %33 = vector.load %arg5[%c0_33, %c0_34] : memref<1x64xf32, #tpu.memory_space<vmem>>, vector<1x64xf32>
    %34 = vector.broadcast %33 : vector<1x64xf32> to vector<16x64xf32>
    %35 = arith.addf %32, %34 : vector<16x64xf32>
    %c0_35 = arith.constant 0 : index
    %c0_36 = arith.constant 0 : index
    %c0_37 = arith.constant 0 : index
    %36 = vector.load %arg6[%c0_35, %c0_36, %c0_37] : memref<1x16x64xf32, #tpu.memory_space<vmem>>, vector<1x16x64xf32>
    %37 = vector.shape_cast %36 : vector<1x16x64xf32> to vector<16x64xf32>
    %38 = vector.shape_cast %35 : vector<16x64xf32> to vector<1x16x64xf32>
    tpu.vector_store %arg6[%c0_35, %c0_36, %c0_37], %38 {strides = array<i32>} : memref<1x16x64xf32, #tpu.memory_space<vmem>>, vector<1x16x64xf32>,
    %cst_38 = arith.constant dense<0.000000e+00> : vector<64xf32>
    %39 = vector.multi_reduction <add>, %35, %cst_38 [0] : vector<16x64xf32> to vector<64xf32>
    %40 = vector.shape_cast %39 : vector<64xf32> to vector<1x64xf32>
    %c0_39 = arith.constant 0 : index
    %c0_40 = arith.constant 0 : index
    %c0_41 = arith.constant 0 : index
    %41 = vector.load %arg7[%c0_39, %c0_40, %c0_41] : memref<1x1x64xf32, #tpu.memory_space<vmem>>, vector<1x1x64xf32>
    %42 = vector.shape_cast %41 : vector<1x1x64xf32> to vector<1x64xf32>
    %43 = vector.shape_cast %40 : vector<1x64xf32> to vector<1x1x64xf32>
    tpu.vector_store %arg7[%c0_39, %c0_40, %c0_41], %43 {strides = array<i32>} : memref<1x1x64xf32, #tpu.memory_space<vmem>>, vector<1x1x64xf32>,
    %44 = arith.mulf %35, %35 : vector<16x64xf32>
    %cst_42 = arith.constant dense<0.000000e+00> : vector<64xf32>
    %45 = vector.multi_reduction <add>, %44, %cst_42 [0] : vector<16x64xf32> to vector<64xf32>
    %46 = vector.shape_cast %45 : vector<64xf32> to vector<1x64xf32>
    %c0_43 = arith.constant 0 : index
    %c0_44 = arith.constant 0 : index
    %c0_45 = arith.constant 0 : index
    %47 = vector.load %arg8[%c0_43, %c0_44, %c0_45] : memref<1x1x64xf32, #tpu.memory_space<vmem>>, vector<1x1x64xf32>
    %48 = vector.shape_cast %47 : vector<1x1x64xf32> to vector<1x64xf32>
    %49 = vector.shape_cast %46 : vector<1x64xf32> to vector<1x1x64xf32>
    tpu.vector_store %arg8[%c0_43, %c0_44, %c0_45], %49 {strides = array<i32>} : memref<1x1x64xf32, #tpu.memory_space<vmem>>, vector<1x1x64xf32>,
    return
  }
  func.func @transform_0(%arg0: i32) -> (i32, i32, i32) {
    %c0_i32 = arith.constant 0 : i32
    %c0_i32_0 = arith.constant 0 : i32
    %c0_i32_1 = arith.constant 0 : i32
    return %arg0, %c0_i32, %c0_i32_0 : i32, i32, i32
  }
  func.func @transform_1(%arg0: i32) -> (i32, i32) {
    %c0_i32 = arith.constant 0 : i32
    %c0_i32_0 = arith.constant 0 : i32
    %c0_i32_1 = arith.constant 0 : i32
    return %c0_i32, %c0_i32_0 : i32, i32
  }
  func.func @transform_2(%arg0: i32) -> (i32, i32) {
    %c0_i32 = arith.constant 0 : i32
    %c0_i32_0 = arith.constant 0 : i32
    %c0_i32_1 = arith.constant 0 : i32
    return %c0_i32, %c0_i32_0 : i32, i32
  }
  func.func @transform_3(%arg0: i32) -> (i32, i32, i32) {
    %c0_i32 = arith.constant 0 : i32
    %c0_i32_0 = arith.constant 0 : i32
    %c0_i32_1 = arith.constant 0 : i32
    %c0_i32_2 = arith.constant 0 : i32
    return %c0_i32, %c0_i32_0, %c0_i32_1 : i32, i32, i32
  }
  func.func @transform_4(%arg0: i32) -> (i32, i32) {
    %c0_i32 = arith.constant 0 : i32
    %c0_i32_0 = arith.constant 0 : i32
    %c0_i32_1 = arith.constant 0 : i32
    return %c0_i32, %c0_i32_0 : i32, i32
  }
  func.func @transform_5(%arg0: i32) -> (i32, i32, i32) {
    %c0_i32 = arith.constant 0 : i32
    %c0_i32_0 = arith.constant 0 : i32
    %c0_i32_1 = arith.constant 0 : i32
    return %arg0, %c0_i32, %c0_i32_0 : i32, i32, i32
  }
  func.func @transform_6(%arg0: i32) -> (i32, i32, i32) {
    %c0_i32 = arith.constant 0 : i32
    %c0_i32_0 = arith.constant 0 : i32
    %c0_i32_1 = arith.constant 0 : i32
    return %arg0, %c0_i32, %c0_i32_0 : i32, i32, i32
  }
  func.func @transform_7(%arg0: i32) -> (i32, i32, i32) {
    %c0_i32 = arith.constant 0 : i32
    %c0_i32_0 = arith.constant 0 : i32
    %c0_i32_1 = arith.constant 0 : i32
    return %arg0, %c0_i32, %c0_i32_0 : i32, i32, i32
  }
}

module attributes {stable_mosaic.version = 11 : i64} {
  func.func @_conv_bn_relu_kernel(%arg0: i32, %arg1: memref<1x16x64xf32, #tpu.memory_space<vmem>>, %arg2: memref<1x64xf32, #tpu.memory_space<vmem>>, %arg3: memref<1x64xf32, #tpu.memory_space<vmem>>, %arg4: memref<3x72x64xf32, #tpu.memory_space<vmem>>, %arg5: memref<1x64xf32, #tpu.memory_space<vmem>>, %arg6: memref<1x16x64xf32, #tpu.memory_space<vmem>>, %arg7: memref<1x16x64xf32, #tpu.memory_space<vmem>>, %arg8: memref<1x1x64xf32, #tpu.memory_space<vmem>>, %arg9: memref<1x1x64xf32, #tpu.memory_space<vmem>>, %arg10: memref<18x72xf32, #tpu.memory_space<vmem>>) attributes {dimension_semantics = [#tpu.dimension_semantics<parallel>], iteration_bounds = array<i64: 2>, scalar_prefetch = 0 : i64, scratch_operands = 1 : i64, tpu.core_type = #tpu.core_type<tc>, window_params = [{transform_indices = @transform_0, window_bounds = array<i64: 1, 16, 64>}, {pipeline_mode = #tpu.pipeline_mode<synchronous>, transform_indices = @transform_1, window_bounds = array<i64: 1, 64>}, {pipeline_mode = #tpu.pipeline_mode<synchronous>, transform_indices = @transform_2, window_bounds = array<i64: 1, 64>}, {pipeline_mode = #tpu.pipeline_mode<synchronous>, transform_indices = @transform_3, window_bounds = array<i64: 3, 72, 64>}, {pipeline_mode = #tpu.pipeline_mode<synchronous>, transform_indices = @transform_4, window_bounds = array<i64: 1, 64>}, {transform_indices = @transform_5, window_bounds = array<i64: 1, 16, 64>}, {transform_indices = @transform_6, window_bounds = array<i64: 1, 16, 64>}, {transform_indices = @transform_7, window_bounds = array<i64: 1, 1, 64>}, {transform_indices = @transform_8, window_bounds = array<i64: 1, 1, 64>}]} {
    %c0 = arith.constant 0 : index
    %c0_0 = arith.constant 0 : index
    %c0_1 = arith.constant 0 : index
    %0 = vector.load %arg1[%c0, %c0_0, %c0_1] : memref<1x16x64xf32, #tpu.memory_space<vmem>>, vector<1x16x64xf32>
    %1 = vector.shape_cast %0 : vector<1x16x64xf32> to vector<16x64xf32>
    %c0_2 = arith.constant 0 : index
    %c0_3 = arith.constant 0 : index
    %2 = vector.load %arg2[%c0_2, %c0_3] : memref<1x64xf32, #tpu.memory_space<vmem>>, vector<1x64xf32>
    %3 = vector.broadcast %2 : vector<1x64xf32> to vector<16x64xf32>
    %4 = arith.mulf %1, %3 : vector<16x64xf32>
    %c0_4 = arith.constant 0 : index
    %c0_5 = arith.constant 0 : index
    %5 = vector.load %arg3[%c0_4, %c0_5] : memref<1x64xf32, #tpu.memory_space<vmem>>, vector<1x64xf32>
    %6 = vector.broadcast %5 : vector<1x64xf32> to vector<16x64xf32>
    %7 = arith.addf %4, %6 : vector<16x64xf32>
    %cst = arith.constant 0.000000e+00 : f32
    %8 = vector.broadcast %cst : f32 to vector<16x64xf32>
    %9 = arith.maximumf %7, %8 : vector<16x64xf32>
    %cst_6 = arith.constant 0.000000e+00 : f32
    %10 = vector.broadcast %cst_6 : f32 to vector<1x72xf32>
    %c0_7 = arith.constant 0 : index
    %c0_8 = arith.constant 0 : index
    %11 = vector.load %arg10[%c0_7, %c0_8] : memref<18x72xf32, #tpu.memory_space<vmem>>, vector<1x72xf32>
    tpu.vector_store %arg10[%c0_7, %c0_8], %10 {strides = array<i32>} : memref<18x72xf32, #tpu.memory_space<vmem>>, vector<1x72xf32>,
    %cst_9 = arith.constant 0.000000e+00 : f32
    %12 = vector.broadcast %cst_9 : f32 to vector<16x4xf32>
    %c1 = arith.constant 1 : index
    %c0_10 = arith.constant 0 : index
    %13 = vector.load %arg10[%c1, %c0_10] : memref<18x72xf32, #tpu.memory_space<vmem>>, vector<16x4xf32>
    tpu.vector_store %arg10[%c1, %c0_10], %12 {strides = array<i32>} : memref<18x72xf32, #tpu.memory_space<vmem>>, vector<16x4xf32>,
    %cst_11 = arith.constant 0.000000e+00 : f32
    %14 = vector.broadcast %cst_11 : f32 to vector<1x72xf32>
    %c17 = arith.constant 17 : index
    %c0_12 = arith.constant 0 : index
    %15 = vector.load %arg10[%c17, %c0_12] : memref<18x72xf32, #tpu.memory_space<vmem>>, vector<1x72xf32>
    tpu.vector_store %arg10[%c17, %c0_12], %14 {strides = array<i32>} : memref<18x72xf32, #tpu.memory_space<vmem>>, vector<1x72xf32>,
    %cst_13 = arith.constant 0.000000e+00 : f32
    %16 = vector.broadcast %cst_13 : f32 to vector<16x4xf32>
    %c1_14 = arith.constant 1 : index
    %c68 = arith.constant 68 : index
    %17 = vector.load %arg10[%c1_14, %c68] : memref<18x72xf32, #tpu.memory_space<vmem>>, vector<16x4xf32>
    tpu.vector_store %arg10[%c1_14, %c68], %16 {strides = array<i32>} : memref<18x72xf32, #tpu.memory_space<vmem>>, vector<16x4xf32>,
    %c1_15 = arith.constant 1 : index
    %c4 = arith.constant 4 : index
    %18 = vector.load %arg10[%c1_15, %c4] : memref<18x72xf32, #tpu.memory_space<vmem>>, vector<16x64xf32>
    tpu.vector_store %arg10[%c1_15, %c4], %9 {strides = array<i32>} : memref<18x72xf32, #tpu.memory_space<vmem>>, vector<16x64xf32>,
    %c0_16 = arith.constant 0 : index
    %c0_17 = arith.constant 0 : index
    %19 = vector.load %arg10[%c0_16, %c0_17] : memref<18x72xf32, #tpu.memory_space<vmem>>, vector<16x72xf32>
    %c0_18 = arith.constant 0 : index
    %c0_19 = arith.constant 0 : index
    %c0_20 = arith.constant 0 : index
    %20 = vector.load %arg4[%c0_18, %c0_19, %c0_20] : memref<3x72x64xf32, #tpu.memory_space<vmem>>, vector<1x72x64xf32>
    %21 = vector.shape_cast %20 : vector<1x72x64xf32> to vector<72x64xf32>
    %cst_21 = arith.constant dense<0.000000e+00> : vector<16x64xf32>
    %22 = tpu.matmul %19, %21, %cst_21 {dimension_numbers = #tpu.dot_dimension_numbers<[1], [0], [0], [1], [0, 0, 1, 1], [], []>} : vector<16x72xf32>, vector<72x64xf32>, vector<16x64xf32> -> vector<16x64xf32>
    %c1_22 = arith.constant 1 : index
    %c0_23 = arith.constant 0 : index
    %23 = vector.load %arg10[%c1_22, %c0_23] : memref<18x72xf32, #tpu.memory_space<vmem>>, vector<16x72xf32>
    %c1_24 = arith.constant 1 : index
    %c0_25 = arith.constant 0 : index
    %c0_26 = arith.constant 0 : index
    %24 = vector.load %arg4[%c1_24, %c0_25, %c0_26] : memref<3x72x64xf32, #tpu.memory_space<vmem>>, vector<1x72x64xf32>
    %25 = vector.shape_cast %24 : vector<1x72x64xf32> to vector<72x64xf32>
    %cst_27 = arith.constant dense<0.000000e+00> : vector<16x64xf32>
    %26 = tpu.matmul %23, %25, %cst_27 {dimension_numbers = #tpu.dot_dimension_numbers<[1], [0], [0], [1], [0, 0, 1, 1], [], []>} : vector<16x72xf32>, vector<72x64xf32>, vector<16x64xf32> -> vector<16x64xf32>
    %27 = arith.addf %22, %26 : vector<16x64xf32>
    %c2 = arith.constant 2 : index
    %c0_28 = arith.constant 0 : index
    %28 = vector.load %arg10[%c2, %c0_28] : memref<18x72xf32, #tpu.memory_space<vmem>>, vector<16x72xf32>
    %c2_29 = arith.constant 2 : index
    %c0_30 = arith.constant 0 : index
    %c0_31 = arith.constant 0 : index
    %29 = vector.load %arg4[%c2_29, %c0_30, %c0_31] : memref<3x72x64xf32, #tpu.memory_space<vmem>>, vector<1x72x64xf32>
    %30 = vector.shape_cast %29 : vector<1x72x64xf32> to vector<72x64xf32>
    %cst_32 = arith.constant dense<0.000000e+00> : vector<16x64xf32>
    %31 = tpu.matmul %28, %30, %cst_32 {dimension_numbers = #tpu.dot_dimension_numbers<[1], [0], [0], [1], [0, 0, 1, 1], [], []>} : vector<16x72xf32>, vector<72x64xf32>, vector<16x64xf32> -> vector<16x64xf32>
    %32 = arith.addf %27, %31 : vector<16x64xf32>
    %c0_33 = arith.constant 0 : index
    %c0_34 = arith.constant 0 : index
    %33 = vector.load %arg5[%c0_33, %c0_34] : memref<1x64xf32, #tpu.memory_space<vmem>>, vector<1x64xf32>
    %34 = vector.broadcast %33 : vector<1x64xf32> to vector<16x64xf32>
    %35 = arith.addf %32, %34 : vector<16x64xf32>
    %c0_35 = arith.constant 0 : index
    %c0_36 = arith.constant 0 : index
    %c0_37 = arith.constant 0 : index
    %36 = vector.load %arg6[%c0_35, %c0_36, %c0_37] : memref<1x16x64xf32, #tpu.memory_space<vmem>>, vector<1x16x64xf32>
    %37 = vector.shape_cast %36 : vector<1x16x64xf32> to vector<16x64xf32>
    %38 = arith.addf %35, %37 : vector<16x64xf32>
    %c0_38 = arith.constant 0 : index
    %c0_39 = arith.constant 0 : index
    %c0_40 = arith.constant 0 : index
    %39 = vector.load %arg7[%c0_38, %c0_39, %c0_40] : memref<1x16x64xf32, #tpu.memory_space<vmem>>, vector<1x16x64xf32>
    %40 = vector.shape_cast %39 : vector<1x16x64xf32> to vector<16x64xf32>
    %41 = vector.shape_cast %38 : vector<16x64xf32> to vector<1x16x64xf32>
    tpu.vector_store %arg7[%c0_38, %c0_39, %c0_40], %41 {strides = array<i32>} : memref<1x16x64xf32, #tpu.memory_space<vmem>>, vector<1x16x64xf32>,
    %cst_41 = arith.constant dense<0.000000e+00> : vector<64xf32>
    %42 = vector.multi_reduction <add>, %38, %cst_41 [0] : vector<16x64xf32> to vector<64xf32>
    %43 = vector.shape_cast %42 : vector<64xf32> to vector<1x64xf32>
    %c0_42 = arith.constant 0 : index
    %c0_43 = arith.constant 0 : index
    %c0_44 = arith.constant 0 : index
    %44 = vector.load %arg8[%c0_42, %c0_43, %c0_44] : memref<1x1x64xf32, #tpu.memory_space<vmem>>, vector<1x1x64xf32>
    %45 = vector.shape_cast %44 : vector<1x1x64xf32> to vector<1x64xf32>
    %46 = vector.shape_cast %43 : vector<1x64xf32> to vector<1x1x64xf32>
    tpu.vector_store %arg8[%c0_42, %c0_43, %c0_44], %46 {strides = array<i32>} : memref<1x1x64xf32, #tpu.memory_space<vmem>>, vector<1x1x64xf32>,
    %47 = arith.mulf %38, %38 : vector<16x64xf32>
    %cst_45 = arith.constant dense<0.000000e+00> : vector<64xf32>
    %48 = vector.multi_reduction <add>, %47, %cst_45 [0] : vector<16x64xf32> to vector<64xf32>
    %49 = vector.shape_cast %48 : vector<64xf32> to vector<1x64xf32>
    %c0_46 = arith.constant 0 : index
    %c0_47 = arith.constant 0 : index
    %c0_48 = arith.constant 0 : index
    %50 = vector.load %arg9[%c0_46, %c0_47, %c0_48] : memref<1x1x64xf32, #tpu.memory_space<vmem>>, vector<1x1x64xf32>
    %51 = vector.shape_cast %50 : vector<1x1x64xf32> to vector<1x64xf32>
    %52 = vector.shape_cast %49 : vector<1x64xf32> to vector<1x1x64xf32>
    tpu.vector_store %arg9[%c0_46, %c0_47, %c0_48], %52 {strides = array<i32>} : memref<1x1x64xf32, #tpu.memory_space<vmem>>, vector<1x1x64xf32>,
    return
  }
  func.func @transform_0(%arg0: i32) -> (i32, i32, i32) {
    %c0_i32 = arith.constant 0 : i32
    %c0_i32_0 = arith.constant 0 : i32
    %c0_i32_1 = arith.constant 0 : i32
    return %arg0, %c0_i32, %c0_i32_0 : i32, i32, i32
  }
  func.func @transform_1(%arg0: i32) -> (i32, i32) {
    %c0_i32 = arith.constant 0 : i32
    %c0_i32_0 = arith.constant 0 : i32
    %c0_i32_1 = arith.constant 0 : i32
    return %c0_i32, %c0_i32_0 : i32, i32
  }
  func.func @transform_2(%arg0: i32) -> (i32, i32) {
    %c0_i32 = arith.constant 0 : i32
    %c0_i32_0 = arith.constant 0 : i32
    %c0_i32_1 = arith.constant 0 : i32
    return %c0_i32, %c0_i32_0 : i32, i32
  }
  func.func @transform_3(%arg0: i32) -> (i32, i32, i32) {
    %c0_i32 = arith.constant 0 : i32
    %c0_i32_0 = arith.constant 0 : i32
    %c0_i32_1 = arith.constant 0 : i32
    %c0_i32_2 = arith.constant 0 : i32
    return %c0_i32, %c0_i32_0, %c0_i32_1 : i32, i32, i32
  }
  func.func @transform_4(%arg0: i32) -> (i32, i32) {
    %c0_i32 = arith.constant 0 : i32
    %c0_i32_0 = arith.constant 0 : i32
    %c0_i32_1 = arith.constant 0 : i32
    return %c0_i32, %c0_i32_0 : i32, i32
  }
  func.func @transform_5(%arg0: i32) -> (i32, i32, i32) {
    %c0_i32 = arith.constant 0 : i32
    %c0_i32_0 = arith.constant 0 : i32
    %c0_i32_1 = arith.constant 0 : i32
    return %arg0, %c0_i32, %c0_i32_0 : i32, i32, i32
  }
  func.func @transform_6(%arg0: i32) -> (i32, i32, i32) {
    %c0_i32 = arith.constant 0 : i32
    %c0_i32_0 = arith.constant 0 : i32
    %c0_i32_1 = arith.constant 0 : i32
    return %arg0, %c0_i32, %c0_i32_0 : i32, i32, i32
  }
  func.func @transform_7(%arg0: i32) -> (i32, i32, i32) {
    %c0_i32 = arith.constant 0 : i32
    %c0_i32_0 = arith.constant 0 : i32
    %c0_i32_1 = arith.constant 0 : i32
    return %arg0, %c0_i32, %c0_i32_0 : i32, i32, i32
  }
  func.func @transform_8(%arg0: i32) -> (i32, i32, i32) {
    %c0_i32 = arith.constant 0 : i32
    %c0_i32_0 = arith.constant 0 : i32
    %c0_i32_1 = arith.constant 0 : i32
    return %arg0, %c0_i32, %c0_i32_0 : i32, i32, i32
  }
}

module attributes {stable_mosaic.version = 11 : i64} {
  func.func @_conv_bn_relu_kernel(%arg0: i32, %arg1: memref<1x16x64xf32, #tpu.memory_space<vmem>>, %arg2: memref<1x64xf32, #tpu.memory_space<vmem>>, %arg3: memref<1x64xf32, #tpu.memory_space<vmem>>, %arg4: memref<3x72x64xf32, #tpu.memory_space<vmem>>, %arg5: memref<1x64xf32, #tpu.memory_space<vmem>>, %arg6: memref<1x16x64xf32, #tpu.memory_space<vmem>>, %arg7: memref<1x16x64xf32, #tpu.memory_space<vmem>>, %arg8: memref<1x1x64xf32, #tpu.memory_space<vmem>>, %arg9: memref<1x1x64xf32, #tpu.memory_space<vmem>>, %arg10: memref<18x72xf32, #tpu.memory_space<vmem>>) attributes {dimension_semantics = [#tpu.dimension_semantics<parallel>], iteration_bounds = array<i64: 2>, scalar_prefetch = 0 : i64, scratch_operands = 1 : i64, tpu.core_type = #tpu.core_type<tc>, window_params = [{transform_indices = @transform_0, window_bounds = array<i64: 1, 16, 64>}, {pipeline_mode = #tpu.pipeline_mode<synchronous>, transform_indices = @transform_1, window_bounds = array<i64: 1, 64>}, {pipeline_mode = #tpu.pipeline_mode<synchronous>, transform_indices = @transform_2, window_bounds = array<i64: 1, 64>}, {pipeline_mode = #tpu.pipeline_mode<synchronous>, transform_indices = @transform_3, window_bounds = array<i64: 3, 72, 64>}, {pipeline_mode = #tpu.pipeline_mode<synchronous>, transform_indices = @transform_4, window_bounds = array<i64: 1, 64>}, {transform_indices = @transform_5, window_bounds = array<i64: 1, 16, 64>}, {transform_indices = @transform_6, window_bounds = array<i64: 1, 16, 64>}, {transform_indices = @transform_7, window_bounds = array<i64: 1, 1, 64>}, {transform_indices = @transform_8, window_bounds = array<i64: 1, 1, 64>}]} {
    %c0 = arith.constant 0 : index
    %c0_0 = arith.constant 0 : index
    %c0_1 = arith.constant 0 : index
    %0 = vector.load %arg1[%c0, %c0_0, %c0_1] : memref<1x16x64xf32, #tpu.memory_space<vmem>>, vector<1x16x64xf32>
    %1 = vector.shape_cast %0 : vector<1x16x64xf32> to vector<16x64xf32>
    %c0_2 = arith.constant 0 : index
    %c0_3 = arith.constant 0 : index
    %2 = vector.load %arg2[%c0_2, %c0_3] : memref<1x64xf32, #tpu.memory_space<vmem>>, vector<1x64xf32>
    %3 = vector.broadcast %2 : vector<1x64xf32> to vector<16x64xf32>
    %4 = arith.mulf %1, %3 : vector<16x64xf32>
    %c0_4 = arith.constant 0 : index
    %c0_5 = arith.constant 0 : index
    %5 = vector.load %arg3[%c0_4, %c0_5] : memref<1x64xf32, #tpu.memory_space<vmem>>, vector<1x64xf32>
    %6 = vector.broadcast %5 : vector<1x64xf32> to vector<16x64xf32>
    %7 = arith.addf %4, %6 : vector<16x64xf32>
    %cst = arith.constant 0.000000e+00 : f32
    %8 = vector.broadcast %cst : f32 to vector<16x64xf32>
    %9 = arith.maximumf %7, %8 : vector<16x64xf32>
    %cst_6 = arith.constant 0.000000e+00 : f32
    %10 = vector.broadcast %cst_6 : f32 to vector<1x72xf32>
    %c0_7 = arith.constant 0 : index
    %c0_8 = arith.constant 0 : index
    %11 = vector.load %arg10[%c0_7, %c0_8] : memref<18x72xf32, #tpu.memory_space<vmem>>, vector<1x72xf32>
    tpu.vector_store %arg10[%c0_7, %c0_8], %10 {strides = array<i32>} : memref<18x72xf32, #tpu.memory_space<vmem>>, vector<1x72xf32>,
    %cst_9 = arith.constant 0.000000e+00 : f32
    %12 = vector.broadcast %cst_9 : f32 to vector<16x4xf32>
    %c1 = arith.constant 1 : index
    %c0_10 = arith.constant 0 : index
    %13 = vector.load %arg10[%c1, %c0_10] : memref<18x72xf32, #tpu.memory_space<vmem>>, vector<16x4xf32>
    tpu.vector_store %arg10[%c1, %c0_10], %12 {strides = array<i32>} : memref<18x72xf32, #tpu.memory_space<vmem>>, vector<16x4xf32>,
    %cst_11 = arith.constant 0.000000e+00 : f32
    %14 = vector.broadcast %cst_11 : f32 to vector<1x72xf32>
    %c17 = arith.constant 17 : index
    %c0_12 = arith.constant 0 : index
    %15 = vector.load %arg10[%c17, %c0_12] : memref<18x72xf32, #tpu.memory_space<vmem>>, vector<1x72xf32>
    tpu.vector_store %arg10[%c17, %c0_12], %14 {strides = array<i32>} : memref<18x72xf32, #tpu.memory_space<vmem>>, vector<1x72xf32>,
    %cst_13 = arith.constant 0.000000e+00 : f32
    %16 = vector.broadcast %cst_13 : f32 to vector<16x4xf32>
    %c1_14 = arith.constant 1 : index
    %c68 = arith.constant 68 : index
    %17 = vector.load %arg10[%c1_14, %c68] : memref<18x72xf32, #tpu.memory_space<vmem>>, vector<16x4xf32>
    tpu.vector_store %arg10[%c1_14, %c68], %16 {strides = array<i32>} : memref<18x72xf32, #tpu.memory_space<vmem>>, vector<16x4xf32>,
    %c1_15 = arith.constant 1 : index
    %c4 = arith.constant 4 : index
    %18 = vector.load %arg10[%c1_15, %c4] : memref<18x72xf32, #tpu.memory_space<vmem>>, vector<16x64xf32>
    tpu.vector_store %arg10[%c1_15, %c4], %9 {strides = array<i32>} : memref<18x72xf32, #tpu.memory_space<vmem>>, vector<16x64xf32>,
    %c0_16 = arith.constant 0 : index
    %c0_17 = arith.constant 0 : index
    %19 = vector.load %arg10[%c0_16, %c0_17] : memref<18x72xf32, #tpu.memory_space<vmem>>, vector<16x72xf32>
    %c0_18 = arith.constant 0 : index
    %c0_19 = arith.constant 0 : index
    %c0_20 = arith.constant 0 : index
    %20 = vector.load %arg4[%c0_18, %c0_19, %c0_20] : memref<3x72x64xf32, #tpu.memory_space<vmem>>, vector<1x72x64xf32>
    %21 = vector.shape_cast %20 : vector<1x72x64xf32> to vector<72x64xf32>
    %cst_21 = arith.constant dense<0.000000e+00> : vector<16x64xf32>
    %22 = tpu.matmul %19, %21, %cst_21 {dimension_numbers = #tpu.dot_dimension_numbers<[1], [0], [0], [1], [0, 0, 1, 1], [], []>} : vector<16x72xf32>, vector<72x64xf32>, vector<16x64xf32> -> vector<16x64xf32>
    %c1_22 = arith.constant 1 : index
    %c0_23 = arith.constant 0 : index
    %23 = vector.load %arg10[%c1_22, %c0_23] : memref<18x72xf32, #tpu.memory_space<vmem>>, vector<16x72xf32>
    %c1_24 = arith.constant 1 : index
    %c0_25 = arith.constant 0 : index
    %c0_26 = arith.constant 0 : index
    %24 = vector.load %arg4[%c1_24, %c0_25, %c0_26] : memref<3x72x64xf32, #tpu.memory_space<vmem>>, vector<1x72x64xf32>
    %25 = vector.shape_cast %24 : vector<1x72x64xf32> to vector<72x64xf32>
    %cst_27 = arith.constant dense<0.000000e+00> : vector<16x64xf32>
    %26 = tpu.matmul %23, %25, %cst_27 {dimension_numbers = #tpu.dot_dimension_numbers<[1], [0], [0], [1], [0, 0, 1, 1], [], []>} : vector<16x72xf32>, vector<72x64xf32>, vector<16x64xf32> -> vector<16x64xf32>
    %27 = arith.addf %22, %26 : vector<16x64xf32>
    %c2 = arith.constant 2 : index
    %c0_28 = arith.constant 0 : index
    %28 = vector.load %arg10[%c2, %c0_28] : memref<18x72xf32, #tpu.memory_space<vmem>>, vector<16x72xf32>
    %c2_29 = arith.constant 2 : index
    %c0_30 = arith.constant 0 : index
    %c0_31 = arith.constant 0 : index
    %29 = vector.load %arg4[%c2_29, %c0_30, %c0_31] : memref<3x72x64xf32, #tpu.memory_space<vmem>>, vector<1x72x64xf32>
    %30 = vector.shape_cast %29 : vector<1x72x64xf32> to vector<72x64xf32>
    %cst_32 = arith.constant dense<0.000000e+00> : vector<16x64xf32>
    %31 = tpu.matmul %28, %30, %cst_32 {dimension_numbers = #tpu.dot_dimension_numbers<[1], [0], [0], [1], [0, 0, 1, 1], [], []>} : vector<16x72xf32>, vector<72x64xf32>, vector<16x64xf32> -> vector<16x64xf32>
    %32 = arith.addf %27, %31 : vector<16x64xf32>
    %c0_33 = arith.constant 0 : index
    %c0_34 = arith.constant 0 : index
    %33 = vector.load %arg5[%c0_33, %c0_34] : memref<1x64xf32, #tpu.memory_space<vmem>>, vector<1x64xf32>
    %34 = vector.broadcast %33 : vector<1x64xf32> to vector<16x64xf32>
    %35 = arith.addf %32, %34 : vector<16x64xf32>
    %c0_35 = arith.constant 0 : index
    %c0_36 = arith.constant 0 : index
    %c0_37 = arith.constant 0 : index
    %36 = vector.load %arg6[%c0_35, %c0_36, %c0_37] : memref<1x16x64xf32, #tpu.memory_space<vmem>>, vector<1x16x64xf32>
    %37 = vector.shape_cast %36 : vector<1x16x64xf32> to vector<16x64xf32>
    %38 = arith.addf %35, %37 : vector<16x64xf32>
    %c0_38 = arith.constant 0 : index
    %c0_39 = arith.constant 0 : index
    %c0_40 = arith.constant 0 : index
    %39 = vector.load %arg7[%c0_38, %c0_39, %c0_40] : memref<1x16x64xf32, #tpu.memory_space<vmem>>, vector<1x16x64xf32>
    %40 = vector.shape_cast %39 : vector<1x16x64xf32> to vector<16x64xf32>
    %41 = vector.shape_cast %38 : vector<16x64xf32> to vector<1x16x64xf32>
    tpu.vector_store %arg7[%c0_38, %c0_39, %c0_40], %41 {strides = array<i32>} : memref<1x16x64xf32, #tpu.memory_space<vmem>>, vector<1x16x64xf32>,
    %cst_41 = arith.constant dense<0.000000e+00> : vector<64xf32>
    %42 = vector.multi_reduction <add>, %38, %cst_41 [0] : vector<16x64xf32> to vector<64xf32>
    %43 = vector.shape_cast %42 : vector<64xf32> to vector<1x64xf32>
    %c0_42 = arith.constant 0 : index
    %c0_43 = arith.constant 0 : index
    %c0_44 = arith.constant 0 : index
    %44 = vector.load %arg8[%c0_42, %c0_43, %c0_44] : memref<1x1x64xf32, #tpu.memory_space<vmem>>, vector<1x1x64xf32>
    %45 = vector.shape_cast %44 : vector<1x1x64xf32> to vector<1x64xf32>
    %46 = vector.shape_cast %43 : vector<1x64xf32> to vector<1x1x64xf32>
    tpu.vector_store %arg8[%c0_42, %c0_43, %c0_44], %46 {strides = array<i32>} : memref<1x1x64xf32, #tpu.memory_space<vmem>>, vector<1x1x64xf32>,
    %47 = arith.mulf %38, %38 : vector<16x64xf32>
    %cst_45 = arith.constant dense<0.000000e+00> : vector<64xf32>
    %48 = vector.multi_reduction <add>, %47, %cst_45 [0] : vector<16x64xf32> to vector<64xf32>
    %49 = vector.shape_cast %48 : vector<64xf32> to vector<1x64xf32>
    %c0_46 = arith.constant 0 : index
    %c0_47 = arith.constant 0 : index
    %c0_48 = arith.constant 0 : index
    %50 = vector.load %arg9[%c0_46, %c0_47, %c0_48] : memref<1x1x64xf32, #tpu.memory_space<vmem>>, vector<1x1x64xf32>
    %51 = vector.shape_cast %50 : vector<1x1x64xf32> to vector<1x64xf32>
    %52 = vector.shape_cast %49 : vector<1x64xf32> to vector<1x1x64xf32>
    tpu.vector_store %arg9[%c0_46, %c0_47, %c0_48], %52 {strides = array<i32>} : memref<1x1x64xf32, #tpu.memory_space<vmem>>, vector<1x1x64xf32>,
    return
  }
  func.func @transform_0(%arg0: i32) -> (i32, i32, i32) {
    %c0_i32 = arith.constant 0 : i32
    %c0_i32_0 = arith.constant 0 : i32
    %c0_i32_1 = arith.constant 0 : i32
    return %arg0, %c0_i32, %c0_i32_0 : i32, i32, i32
  }
  func.func @transform_1(%arg0: i32) -> (i32, i32) {
    %c0_i32 = arith.constant 0 : i32
    %c0_i32_0 = arith.constant 0 : i32
    %c0_i32_1 = arith.constant 0 : i32
    return %c0_i32, %c0_i32_0 : i32, i32
  }
  func.func @transform_2(%arg0: i32) -> (i32, i32) {
    %c0_i32 = arith.constant 0 : i32
    %c0_i32_0 = arith.constant 0 : i32
    %c0_i32_1 = arith.constant 0 : i32
    return %c0_i32, %c0_i32_0 : i32, i32
  }
  func.func @transform_3(%arg0: i32) -> (i32, i32, i32) {
    %c0_i32 = arith.constant 0 : i32
    %c0_i32_0 = arith.constant 0 : i32
    %c0_i32_1 = arith.constant 0 : i32
    %c0_i32_2 = arith.constant 0 : i32
    return %c0_i32, %c0_i32_0, %c0_i32_1 : i32, i32, i32
  }
  func.func @transform_4(%arg0: i32) -> (i32, i32) {
    %c0_i32 = arith.constant 0 : i32
    %c0_i32_0 = arith.constant 0 : i32
    %c0_i32_1 = arith.constant 0 : i32
    return %c0_i32, %c0_i32_0 : i32, i32
  }
  func.func @transform_5(%arg0: i32) -> (i32, i32, i32) {
    %c0_i32 = arith.constant 0 : i32
    %c0_i32_0 = arith.constant 0 : i32
    %c0_i32_1 = arith.constant 0 : i32
    return %arg0, %c0_i32, %c0_i32_0 : i32, i32, i32
  }
  func.func @transform_6(%arg0: i32) -> (i32, i32, i32) {
    %c0_i32 = arith.constant 0 : i32
    %c0_i32_0 = arith.constant 0 : i32
    %c0_i32_1 = arith.constant 0 : i32
    return %arg0, %c0_i32, %c0_i32_0 : i32, i32, i32
  }
  func.func @transform_7(%arg0: i32) -> (i32, i32, i32) {
    %c0_i32 = arith.constant 0 : i32
    %c0_i32_0 = arith.constant 0 : i32
    %c0_i32_1 = arith.constant 0 : i32
    return %arg0, %c0_i32, %c0_i32_0 : i32, i32, i32
  }
  func.func @transform_8(%arg0: i32) -> (i32, i32, i32) {
    %c0_i32 = arith.constant 0 : i32
    %c0_i32_0 = arith.constant 0 : i32
    %c0_i32_1 = arith.constant 0 : i32
    return %arg0, %c0_i32, %c0_i32_0 : i32, i32, i32
  }
}

</mosaic_0001>

<bundles_post_ra>
// kernel: tile.48
= control target key start
LH: loop header
LB: loop body
LE: loop exit
PB: predicated region body
PF: predicated region fallthrough
CT: control target
= control target key end

     0   :  { %s28_s0 = inlined_call_operand.vmem [shape: f32[4], index: 0, kind: input, shape index: {}]   ;;  %s29_s1 = inlined_call_operand.vmem [shape: f32[16,4], index: 1, kind: output, shape index: {}]  }
   0x1   :  { %v4_v0 = vld [vmem:[%s28_s0] ss:$0 sm:$0xff] }
   0x2   :  { %5 = vst [vmem:[%s29_s1] sm:$0xff] %v4_v0  ;;  %8 = vst [vmem:[%s29_s1 + $0x8] sm:$0xff] %v4_v0 }

// kernel: tile.49
= control target key start
LH: loop header
LB: loop body
LE: loop exit
PB: predicated region body
PF: predicated region fallthrough
CT: control target
= control target key end

     0   :  { %s131_s10 = smov 60   ;;  %s132_s11 = smov 52   ;;  %vm3_vm0 = vcmask 31744   ;;  %vm9_vm1 = vcmask 523744   ;;  %vm15_vm2 = vcmask 490944   ;;  %vm21_vm3 = vcmask 458144   ;;  %s207_s0 = inlined_call_operand.vmem [shape: f32[16,4], index: 0, kind: input, shape index: {}]   ;;  %s208_s1 = inlined_call_operand.vmem [shape: f32[1,64], index: 1, kind: output, shape index: {}]  }
   0x1   :  { %v101_v0 = vld [vmem:[%s207_s0 + $0xf] sm:$0x1]   ;;  %v103_v1 = vld [vmem:[%s207_s0 + $0xd] sm:$0x1]   ;;  %v102_v2 = vld [vmem:[%s207_s0 + $0xe] sm:$0x1]  }
   0x2   :  { %7 = vrot.lane.b32.xlu0 %v101_v0, %s131_s10  ;;  %19 = vrot.lane.b32.xlu1 %v103_v1, %s132_s11  ;;  %v104_v3 = vld [vmem:[%s207_s0 + $0xc] sm:$0x1]   ;;  %s133_s16 = smov 56   ;;  %s134_s17 = smov 48   ;;  %v105_v4 = vld [vmem:[%s207_s0 + $0xb] sm:$0x1]  }
   0x3   :  { %v106_v5 = vld [vmem:[%s207_s0 + $0xa] sm:$0x1]   ;;  %v2_v6 = vld [vmem:[%s207_s0] sm:$0x1]   ;;  %s135_s24 = smov 44   ;;  %s136_s25 = smov 40  }
   0x4   :  { %4 = vst.msk [vmem:[#allocation0] sm:$0x1] %vm3_vm0, %v2_v6   ;;  %v107_v7 = vld [vmem:[%s207_s0 + $0x9] sm:$0x1]   ;;  %v108_v8 = vld [vmem:[%s207_s0 + $0x8] sm:$0x1]  }
   0x5   :  { %s137_s30 = smov 36   ;;  %s138_s2 = smov 32   ;;  %v109_v9 = vld [vmem:[%s207_s0 + $0x7] sm:$0x1]   ;;  %v110_v10 = vld [vmem:[%s207_s0 + $0x6] sm:$0x1]  }
   0x6   :  { %13 = vrot.lane.b32.xlu0 %v102_v2, %s133_s16  ;;  %25 = vrot.lane.b32.xlu1 %v104_v3, %s134_s17  ;;  %s139_s7 = smov 28   ;;  %s140_s8 = smov 24   ;;  %v111_v11 = vld [vmem:[%s207_s0 + $0x5] sm:$0x1]   ;;  %v112_v12 = vld [vmem:[%s207_s0 + $0x4] sm:$0x1]  }
   0x7   :  { %s141_s13 = smov 20   ;;  %s142_s14 = smov 16   ;;  %v113_v13 = vld [vmem:[%s207_s0 + $0x3] sm:$0x1]   ;;  %v114_v14 = vld [vmem:[%s207_s0 + $0x2] sm:$0x1]  }
   0x8   :  { %s143_s19 = smov 12   ;;  %s144_s20 = smov 8   ;;  %v115_v15 = vld [vmem:[%s207_s0 + $0x1] sm:$0x1]   ;;  %vm27_vm4 = vcmask 425344   ;;  %vm33_vm5 = vcmask 392544  }
   0x9   :  { %s145_s0 = smov 4   ;;  %vm39_vm6 = vcmask 359744   ;;  %vm45_vm7 = vcmask 326944   ;;  %vm51_vm8 = vcmask 294144   ;;  %vm57_vm9 = vcmask 261344  }
   0xa   :  { %31 = vrot.lane.b32.xlu0 %v105_v4, %s135_s24  ;;  %37 = vrot.lane.b32.xlu1 %v106_v5, %s136_s25  ;;  %vm63_vm10 = vcmask 228544   ;;  %vm69_vm11 = vcmask 195744   ;;  %vm75_vm12 = vcmask 162944   ;;  %vm81_vm13 = vcmask 130144  }
   0xb   :  { %vm87_vm14 = vcmask 97344   ;;  %vm93_vm15 = vcmask 64544  }
   0xe   :  { %43 = vrot.lane.b32.xlu0 %v107_v7, %s137_s30  ;;  %49 = vrot.lane.b32.xlu1 %v108_v8, %s138_s2 }
  0x12   :  { %55 = vrot.lane.b32.xlu0 %v109_v9, %s139_s7  ;;  %61 = vrot.lane.b32.xlu1 %v110_v10, %s140_s8 }
  0x16   :  { %67 = vrot.lane.b32.xlu0 %v111_v11, %s141_s13  ;;  %73 = vrot.lane.b32.xlu1 %v112_v12, %s142_s14 }
  0x1a   :  { %79 = vrot.lane.b32.xlu0 %v113_v13, %s143_s19  ;;  %85 = vrot.lane.b32.xlu1 %v114_v14, %s144_s20 }
  0x1e   :  { %91 = vrot.lane.b32.xlu0 %v115_v15, %s145_s0 }
  0x74   :  { %v8_v16 = vpop.permute.xlu0 %7   ;;  %v20_v17 = vpop.permute.xlu1 %19  }
  0x75   :  { %10 = vst.msk [vmem:[#allocation0] sm:$0x1] %vm9_vm1, %v8_v16  }
  0x78   :  { %v14_v18 = vpop.permute.xlu0 %13   ;;  %v26_v19 = vpop.permute.xlu1 %25  }
  0x79   :  { %16 = vst.msk [vmem:[#allocation0] sm:$0x1] %vm15_vm2, %v14_v18  }
  0x7a   :  { %22 = vst.msk [vmem:[#allocation0] sm:$0x1] %vm21_vm3, %v20_v17  }
  0x7b   :  { %28 = vst.msk [vmem:[#allocation0] sm:$0x1] %vm27_vm4, %v26_v19  }
  0x7c   :  { %v32_v20 = vpop.permute.xlu0 %31   ;;  %v38_v21 = vpop.permute.xlu1 %37  }
  0x7d   :  { %34 = vst.msk [vmem:[#allocation0] sm:$0x1] %vm33_vm5, %v32_v20  }
  0x7e   :  { %40 = vst.msk [vmem:[#allocation0] sm:$0x1] %vm39_vm6, %v38_v21  }
  0x80   :  { %v44_v22 = vpop.permute.xlu0 %43   ;;  %v50_v23 = vpop.permute.xlu1 %49  }
  0x81   :  { %46 = vst.msk [vmem:[#allocation0] sm:$0x1] %vm45_vm7, %v44_v22  }
  0x82   :  { %52 = vst.msk [vmem:[#allocation0] sm:$0x1] %vm51_vm8, %v50_v23  }
  0x84   :  { %v56_v24 = vpop.permute.xlu0 %55   ;;  %v62_v25 = vpop.permute.xlu1 %61  }
  0x85   :  { %58 = vst.msk [vmem:[#allocation0] sm:$0x1] %vm57_vm9, %v56_v24  }
  0x86   :  { %64 = vst.msk [vmem:[#allocation0] sm:$0x1] %vm63_vm10, %v62_v25  }
  0x88   :  { %v68_v26 = vpop.permute.xlu0 %67   ;;  %v74_v27 = vpop.permute.xlu1 %73  }
  0x89   :  { %70 = vst.msk [vmem:[#allocation0] sm:$0x1] %vm69_vm11, %v68_v26  }
  0x8a   :  { %76 = vst.msk [vmem:[#allocation0] sm:$0x1] %vm75_vm12, %v74_v27  }
  0x8c   :  { %v80_v28 = vpop.permute.xlu0 %79   ;;  %v86_v29 = vpop.permute.xlu1 %85  }
  0x8d   :  { %82 = vst.msk [vmem:[#allocation0] sm:$0x1] %vm81_vm13, %v80_v28  }
  0x8e   :  { %88 = vst.msk [vmem:[#allocation0] sm:$0x1] %vm87_vm14, %v86_v29  }
  0x90   :  { %v92_v30 = vpop.permute.xlu0 %91  }
  0x91   :  { %94 = vst.msk [vmem:[#allocation0] sm:$0x1] %vm93_vm15, %v92_v30  }
  0x98   :  { %v98_v31 = vld [vmem:[#allocation0] sm:$0x1] }
  0x99   :  { %100 = vst [vmem:[%s208_s1] sm:$0x1] %v98_v31 }

// kernel: resnet_forward.5
= control target key start
LH: loop header
LB: loop body
LE: loop exit
PB: predicated region body
PF: predicated region fallthrough
CT: control target
= control target key end

     0   :  { %vm14_vm0 = vcmask 516096   ;;  %vm22_vm1 = vcmask 523264   ;;  %v68_v0 = vmov 0.0   ;;  %s126_s0 = inlined_call_operand.vmem [shape: f32[32,64], index: 0, kind: input, shape index: {}]   ;;  %s127_s1 = inlined_call_operand.vmem [shape: f32[1,64], index: 1, kind: output, shape index: {0}]   ;;  %s128_s2 = inlined_call_operand.vmem [shape: f32[1,64], index: 2, kind: output, shape index: {1}]  }
   0x1   :  { %15 = vst.msk [vmem:[%s127_s1] sm:$0x1] %vm14_vm0, %v68_v0  ;;  %v17_v1 = vld [vmem:[%s126_s0] sm:$0xff]  ;;  %v18_v2 = vld [vmem:[%s126_s0 + $0x8] sm:$0xff]  ;;  %v19_v3 = vld [vmem:[%s126_s0 + $0x10] sm:$0xff] }
   0x2   :  { %16 = vst.msk [vmem:[%s128_s2] sm:$0x1] %vm14_vm0, %v68_v0  ;;  %v20_v4 = vld [vmem:[%s126_s0 + $0x18] sm:$0xff]  ;;  %v23_v5 = vsel %vm22_vm1, %v17_v1, 0.0  ;;  %v24_v6 = vsel %vm22_vm1, %v18_v2, 0.0  ;;  %v26_v7 = vsel %vm22_vm1, %v19_v3, 0.0  ;;  %v40_v8 = vmul.f32 %v17_v1, %v17_v1 }
   0x3   :  { %v25_v9 = vadd.f32 %v24_v6, %v23_v5  ;;  %v41_v10 = vmul.f32 %v18_v2, %v18_v2  ;;  %v42_v11 = vmul.f32 %v19_v3, %v19_v3  ;;  %v28_v12 = vsel %vm22_vm1, %v20_v4, 0.0 }
   0x4   :  { %v43_v13 = vmul.f32 %v20_v4, %v20_v4  ;;  %v44_v14 = vsel %vm22_vm1, %v40_v8, 0.0 }
   0x5   :  { %v27_v15 = vadd.f32 %v26_v7, %v25_v9  ;;  %v45_v16 = vsel %vm22_vm1, %v41_v10, 0.0  ;;  %v47_v17 = vsel %vm22_vm1, %v42_v11, 0.0 }
   0x6   :  { %v46_v18 = vadd.f32 %v45_v16, %v44_v14  ;;  %v49_v20 = vsel %vm22_vm1, %v43_v13, 0.0 }
   0x7   :  { %v29_v19 = vadd.f32 %v28_v12, %v27_v15 }
   0x8   :  { %v48_v21 = vadd.f32 %v47_v17, %v46_v18  ;;  %v21_v31 = vld [vmem:[%s127_s1] sm:$0x1] }
   0x9   :  { %v30_v22 = vrot.slane %v29_v19, 4  ;;  %v39_v36 = vld [vmem:[%s128_s2] sm:$0x1] }
   0xa   :  { %v50_v23 = vadd.f32 %v49_v20, %v48_v21 }
   0xb   :  { %v31_v24 = vadd.f32 %v30_v22, %v29_v19 }
   0xc   :  { %v51_v25 = vrot.slane %v50_v23, 4 }
   0xd   :  { %v32_v26 = vrot.slane %v31_v24, 2 }
   0xe   :  { %v52_v27 = vadd.f32 %v51_v25, %v50_v23 }
   0xf   :  { %v33_v28 = vadd.f32 %v32_v26, %v31_v24 }
  0x10   :  { %v53_v29 = vrot.slane %v52_v27, 2 }
  0x11   :  { %v34_v30 = vrot.slane %v33_v28, 1 }
  0x12   :  { %v54_v32 = vadd.f32 %v53_v29, %v52_v27 }
  0x13   :  { %v35_v33 = vadd.f32 %v34_v30, %v33_v28 }
  0x14   :  { %v55_v34 = vrot.slane %v54_v32, 1 }
  0x15   :  { %v36_v35 = vadd.f32 %v35_v33, %v21_v31 }
  0x16   :  { %v56_v37 = vadd.f32 %v55_v34, %v54_v32 }
  0x17   :  { %38 = vst.msk [vmem:[%s127_s1] sm:$0x1] %vm14_vm0, %v36_v35 }
  0x18   :  { %v57_v38 = vadd.f32 %v56_v37, %v39_v36 }
  0x1a   :  { %58 = vst.msk [vmem:[%s128_s2] sm:$0x1] %vm14_vm0, %v57_v38 }

// kernel: resnet_forward.6
= control target key start
LH: loop header
LB: loop body
LE: loop exit
PB: predicated region body
PF: predicated region fallthrough
CT: control target
= control target key end

     0   :  { %s1007_s24 = smov 0   ;;  %s1135_s0 = inlined_call_operand.vmem [shape: f32[2,16,64], index: 0, kind: input, shape index: {}]   ;;  %s1136_s1 = inlined_call_operand.vmem [shape: f32[1,64], index: 1, kind: input, shape index: {}]   ;;  %s1137_s2 = inlined_call_operand.vmem [shape: f32[1,64], index: 2, kind: input, shape index: {}]   ;;  %s1138_s3 = inlined_call_operand.vmem [shape: f32[3,72,64], index: 3, kind: input, shape index: {}]   ;;  %s1139_s4 = inlined_call_operand.vmem [shape: f32[1,64], index: 4, kind: input, shape index: {}]   ;;  %s1140_s5 = inlined_call_operand.vmem [shape: f32[2,16,64], index: 5, kind: output, shape index: {0}]   ;;  %s1141_s6 = inlined_call_operand.vmem [shape: f32[2,1,64], index: 6, kind: output, shape index: {1}]   ;;  %s1142_s7 = inlined_call_operand.vmem [shape: f32[2,1,64], index: 7, kind: output, shape index: {2}]  }
   0x1 LB: > { %s759_s25 = sadd.s32 4294967295, %s963_s24   ;;  %p763_p0 = scmp.ge.s32.totalorder %s963_s24, 1  ;;  %s963_s24 = sphi %s1007_s24, %s18_s24  }
   0x2   : > { %p242_p1 = scmp.lt.s32.totalorder %s963_s24, 3 }
   0x4   : > { %p243_p2 = pnand %p763_p0, %p242_p1 }
   0x5   : > { %p280_p3 = scmp.lt.s32.totalorder (!%p243_p2), %s759_s25, 1  ;;  %v340_v0 = vld [vmem:[%s1138_s3] sm:$0xff] (!%p243_p2)  ;;  %v341_v1 = vld [vmem:[%s1138_s3 + $0x8] sm:$0xff] (!%p243_p2)  ;;  %vm318_vm0 = vcmask (!%p243_p2), 581632   ;;  %vm320_vm1 = vcmask (!%p243_p2), 31744   ;;  %v771_v5 = vld [vmem:[%s1138_s3 + $0x50] sm:$0xff] (!%p243_p2) }
   0x6   : > { %246 = sbr.rel (%p243_p2) target bundleno = 404 (0x194), region = 40  ;;  %v770_v2 = vld [vmem:[%s1138_s3 + $0x48] sm:$0xff] (!%p243_p2)  ;;  %v768_v3 = vld [vmem:[%s1136_s1] ss:$0 sm:$0xff] (!%p243_p2)  ;;  %v911_v4 = vpack.c.bf16 (!%p243_p2), %v341_v1, %v340_v0  ;;  %v342_v6 = vld [vmem:[%s1138_s3 + $0x10] sm:$0xff] (!%p243_p2)  ;;  %v965_v8 = vmov (!%p243_p2), 0.0  }
   0x7   : > { %v343_v7 = vld [vmem:[%s1138_s3 + $0x18] sm:$0xff] (!%p243_p2)  ;;  %319 = vst.msk [vmem:[#allocation2] sm:$0x1] (!%p243_p2), %vm318_vm0, %v965_v8  ;;  %323 = vst.msk [vmem:[#allocation2 + $0x11] sm:$0x1] (!%p243_p2), %vm318_vm0, %v965_v8  ;;  %vm324_vm2 = vcmask (!%p243_p2), 589344   ;;  %v895_v9 = vpack.c.bf16 (!%p243_p2), %v771_v5, %v770_v2 }
   0x8   : > { %321 = vst.msk [vmem:[#allocation2 + $0x1] sm:$0xff] (!%p243_p2), %vm320_vm1, %v965_v8  ;;  %322 = vst.msk [vmem:[#allocation2 + $0x9] sm:$0xff] (!%p243_p2), %vm320_vm1, %v965_v8  ;;  %v915_v10 = vpack.c.bf16 (!%p243_p2), %v343_v7, %v342_v6  ;;  %v772_v11 = vld [vmem:[%s1138_s3 + $0x58] sm:$0xff] (!%p243_p2)  ;;  %v773_v12 = vld [vmem:[%s1138_s3 + $0x60] sm:$0xff] (!%p243_p2)  ;;  %912 = vmatprep.subr.bf16.mxu0 (!%p243_p2), %v911_v4  ;;  %s966_s22 = smov (!%p243_p2), 4   ;;  %vm335_vm3 = vcmask (!%p243_p2), 556064  }
   0x9   : > { %325 = vst.msk [vmem:[#allocation2 + $0x1] sm:$0xff] (!%p243_p2), %vm324_vm2, %v965_v8  ;;  %v344_v13 = vld [vmem:[%s1138_s3 + $0x20] sm:$0xff] (!%p243_p2)  ;;  %326 = vst.msk [vmem:[#allocation2 + $0x9] sm:$0xff] (!%p243_p2), %vm324_vm2, %v965_v8  ;;  %v899_v14 = vpack.c.bf16 (!%p243_p2), %v773_v12, %v772_v11  ;;  %v345_v15 = vld [vmem:[%s1138_s3 + $0x28] sm:$0xff] (!%p243_p2)  ;;  %896 = vmatprep.subr.bf16.mxu1 (!%p243_p2), %v895_v9  ;;  %914 = vmatpush3.bf16.msra.mxu0 (!%p243_p2), %v911_v4  ;;  %vm361_vm4 = vcmask (!%p243_p2), 588800   ;;  %vm628_vm5 = vcmask (!%p243_p2), 523264  }
   0xa   : > { %v774_v16 = vld [vmem:[%s1138_s3 + $0x68] sm:$0xff] (!%p243_p2)  ;;  %v775_v17 = vld [vmem:[%s1138_s3 + $0x70] sm:$0xff] (!%p243_p2)  ;;  %v769_v20 = vld [vmem:[%s1137_s2] ss:$0 sm:$0xff] (!%p243_p2)  ;;  %898 = vmatpush3.bf16.msra.mxu1 (!%p243_p2), %v895_v9  ;;  %916 = vmatprep.subr.bf16.mxu0 (!%p243_p2), %v915_v10  ;;  %v919_v21 = vpack.c.bf16 (!%p243_p2), %v345_v15, %v344_v13  ;;  %vm640_vm6 = vcmask (!%p243_p2), 516096  }
   0xb   : > { %900 = vmatprep.subr.bf16.mxu1 (!%p243_p2), %v899_v14  ;;  %v903_v24 = vpack.c.bf16 (!%p243_p2), %v775_v17, %v774_v16  ;;  %v346_v25 = vld [vmem:[%s1138_s3 + $0x30] sm:$0xff] (!%p243_p2)  ;;  %v347_v26 = vld [vmem:[%s1138_s3 + $0x38] sm:$0xff] (!%p243_p2)  ;;  %v777_v28 = vld [vmem:[%s1138_s3 + $0x80] sm:$0xff] (!%p243_p2) }
   0xc   : > { %v776_v27 = vld [vmem:[%s1138_s3 + $0x78] sm:$0xff] (!%p243_p2)  ;;  %v923_v31 = vpack.c.bf16 (!%p243_p2), %v347_v26, %v346_v25  ;;  %v348_v35 = vld [vmem:[%s1138_s3 + $0x40] sm:$0xff] (!%p243_p2)  ;;  %v783_v36 = vld [vmem:[%s1138_s3 + $0x90] sm:$0xff] (!%p243_p2) }
   0xd   : > { %s1144_s25 = smov (!%p280_p3, %s759_s25), 1  ;;  %918 = vmatpush3.bf16.msra.mxu0 %v915_v10  ;;  %v907_v33 = vpack.c.bf16 %v777_v28, %v776_v27  ;;  %v784_v37 = vld [vmem:[%s1138_s3 + $0x98] sm:$0xff]  ;;  %v778_v38 = vld [vmem:[%s1138_s3 + $0x88] sm:$0xff]  ;;  %v785_v42 = vld [vmem:[%s1138_s3 + $0xa0] sm:$0xff] }
   0xe   : > { %s797_s23 = sshll.u32 %s1144_s25, 4  ;;  %902 = vmatpush3.bf16.msra.mxu1 %v899_v14  ;;  %920 = vmatprep.subr.bf16.mxu0 %v919_v21  ;;  %v927_v39 = vpack.c.bf16 %v784_v37, %v783_v36  ;;  %v786_v45 = vld [vmem:[%s1138_s3 + $0xa8] sm:$0xff]  ;;  %v787_v47 = vld [vmem:[%s1138_s3 + $0xb0] sm:$0xff]  ;;  %v788_v48 = vld [vmem:[%s1138_s3 + $0xb8] sm:$0xff]  ;;  %s295_s14 = scalar_lea.vmem %s1142_s7, %s1144_s25 }
   0xf   : > { %s284_s11 = scalar_lea.vmem %s1135_s0, %s797_s23  ;;  %904 = vmatprep.subr.bf16.mxu1 %v903_v24  ;;  %v931_v46 = vpack.c.bf16 %v786_v45, %v785_v42  ;;  %v935_v52 = vpack.c.bf16 %v788_v48, %v787_v47  ;;  %v789_v53 = vld [vmem:[%s1138_s3 + $0xc0] sm:$0xff]  ;;  %v790_v54 = vld [vmem:[%s1138_s3 + $0xc8] sm:$0xff]  ;;  %v791_v56 = vld [vmem:[%s1138_s3 + $0xd0] sm:$0xff]  ;;  %s289_s9 = scalar_lea.vmem %s1140_s5, %s797_s23 }
  0x10   : > { %v296_v18 = vld [vmem:[%s284_s11] sm:$0xff]  ;;  %v297_v19 = vld [vmem:[%s284_s11 + $0x8] sm:$0xff]  ;;  %v939_v55 = vpack.c.bf16 %v790_v54, %v789_v53  ;;  %s292_s11 = scalar_lea.vmem %s1141_s6, %s1144_s25 }
  0x11   : > { %v305_v22 = vmul.f32 %v768_v3, %v296_v18  ;;  %v306_v23 = vmul.f32 %v768_v3, %v297_v19  ;;  %922 = vmatpush3.bf16.msra.mxu0 %v919_v21  ;;  %v794_v61 = vld [vmem:[%s1139_s4] ss:$0 sm:$0xff] }
  0x12   : > { %906 = vmatpush3.bf16.msra.mxu1 %v903_v24  ;;  %924 = vmatprep.subr.bf16.mxu0 %v923_v31 }
  0x13   : > { %v314_v29 = vadd.f32 %v769_v20, %v305_v22  ;;  %v315_v30 = vadd.f32 %v769_v20, %v306_v23  ;;  %908 = vmatprep.subr.bf16.mxu1 %v907_v33 }
  0x15   : > { %v316_v32 = vmax.f32 %v314_v29, 0.0  ;;  %v317_v34 = vmax.f32 %v315_v30, 0.0  ;;  %926 = vmatpush3.bf16.msra.mxu0 %v923_v31 }
  0x16   : > { %910 = vmatpush3.bf16.msra.mxu1 %v907_v33  ;;  %869 = vmatprep.subr.mxu0 %v348_v35 }
  0x17   : > { %329 = vrot.lane.b32.xlu0 %v316_v32, %s966_s22  ;;  %848 = vmatprep.subr.mxu1 %v778_v38 }
  0x19   : > { %870 = vmatpush3.msra.mxu0 %v348_v35 }
  0x1a   : > { %849 = vmatpush3.msra.mxu1 %v778_v38  ;;  %928 = vmatprep.subr.bf16.mxu0 %v927_v39 }
  0x1b   : > { %331 = vrot.lane.b32.xlu0 %v317_v34, %s966_s22 }
  0x89   : > { %v330_v40 = vpop.permute.xlu0 %329 }
  0x8a   : > { %336 = vst.msk [vmem:[#allocation2 + $0x1] sm:$0xff] %vm335_vm3, %v330_v40 }
  0x8d   : > { %v332_v41 = vpop.permute.xlu0 %331 }
  0x8e   : > { %337 = vst.msk [vmem:[#allocation2 + $0x9] sm:$0xff] %vm335_vm3, %v332_v41 }
  0x91   : > { %v349_v43 = vld [vmem:[#allocation2 + $0x1] sm:$0xff] }
  0x92   : > { %v338_v44 = vld [vmem:[#allocation2] sm:$0xff]  ;;  %850 = vmatprep.mubr.msk.f32.mxu1 %vm361_vm4, %v349_v43 }
  0x93   : > { %871 = vmatprep.mubr.msk.f32.mxu0 %vm361_vm4, %v338_v44 }
  0x95   : > { %v350_v49 = vld [vmem:[#allocation2 + $0x9] sm:$0xff] }
  0x96   : > { %v339_v50 = vld [vmem:[#allocation2 + $0x8] sm:$0xff]  ;;  %851 = vmatmul.mubr.msk.f32.vlgmr.msra.gmra.mrb[0].mxu1 %vm361_vm4, %v350_v49 }
  0x97   : > { %v524_v51 = vld [vmem:[#allocation2 + $0x2] sm:$0xff]  ;;  %872 = vmatmul.mubr.msk.f32.vlgmr.msra.gmra.mrb[0].mxu0 %vm361_vm4, %v339_v50  ;;  %v525_v57 = vld [vmem:[#allocation2 + $0xa] sm:$0xff] }
  0x98   : > { %930 = vmatpush3.bf16.msra.mxu0 %v927_v39  ;;  %892 = vmatprep.mubr.msk.f32.mxu0 %vm361_vm4, %v524_v51 }
  0x99   : > { %932 = vmatprep.subr.bf16.mxu0 %v931_v46 }
  0x9c   : > { %934 = vmatpush3.bf16.msra.mxu0 %v931_v46 }
  0x9d   : > { %936 = vmatprep.subr.bf16.mxu0 %v935_v52 }
  0xa0   : > { %938 = vmatpush3.bf16.msra.mxu0 %v935_v52 }
  0xa1   : > { %940 = vmatprep.subr.bf16.mxu0 %v939_v55 }
  0xa4   : > { %942 = vmatpush3.bf16.msra.mxu0 %v939_v55 }
  0xa5   : > { %890 = vmatprep.subr.mxu0 %v791_v56 }
  0xa8   : > { %891 = vmatpush3.msra.mxu0 %v791_v56 }
  0xa9   : > { %893 = vmatmul.mubr.msk.f32.vlgmr.msra.gmra.mrb[0].mxu0 %vm361_vm4, %v525_v57 }
 0x169   : > { %v852_v58 = vpop.f32.mrb[0].mxu1 }
 0x16a   : > { %v434_v59 = vpop.f32.mrb[1].mxu1 }
 0x17c   : > { %v894_v60 = vpop.f32.mrb[0].mxu0 }
 0x17d   : > { %v943_v62 = vadd.f32 %v894_v60, %v852_v58  ;;  %v608_v63 = vpop.f32.mrb[1].mxu0 }
 0x17e   : > { %v944_v0 = vadd.f32 %v608_v63, %v434_v59 }
 0x17f   : > { %v627_v1 = vadd.f32 %v943_v62, %v794_v61 }
 0x180   : > { %v626_v2 = vadd.f32 %v944_v0, %v794_v61 }
 0x181   : > { %630 = vst.msk [vmem:[%s289_s9 + $0x8] sm:$0xff] %vm628_vm5, %v627_v1  ;;  %v632_v3 = vsel %vm628_vm5, %v627_v1, 0.0  ;;  %v643_v4 = vmul.f32 %v627_v1, %v627_v1 }
 0x182   : > { %629 = vst.msk [vmem:[%s289_s9] sm:$0xff] %vm628_vm5, %v626_v2  ;;  %v631_v5 = vsel %vm628_vm5, %v626_v2, 0.0  ;;  %v642_v6 = vmul.f32 %v626_v2, %v626_v2 }
 0x183   : > { %v645_v7 = vsel %vm628_vm5, %v643_v4, 0.0  ;;  %v633_v8 = vadd.f32 %v632_v3, %v631_v5 }
 0x184   : > { %v644_v9 = vsel %vm628_vm5, %v642_v6, 0.0 }
 0x185   : > { %v634_v10 = vrot.slane %v633_v8, 4  ;;  %v646_v11 = vadd.f32 %v645_v7, %v644_v9 }
 0x187   : > { %v635_v12 = vadd.f32 %v634_v10, %v633_v8  ;;  %v647_v13 = vrot.slane %v646_v11, 4 }
 0x189   : > { %v636_v14 = vrot.slane %v635_v12, 2  ;;  %v648_v15 = vadd.f32 %v647_v13, %v646_v11 }
 0x18b   : > { %v637_v16 = vadd.f32 %v636_v14, %v635_v12  ;;  %v649_v17 = vrot.slane %v648_v15, 2 }
 0x18d   : > { %v638_v18 = vrot.slane %v637_v16, 1  ;;  %v650_v19 = vadd.f32 %v649_v17, %v648_v15 }
 0x18f   : > { %v639_v20 = vadd.f32 %v638_v18, %v637_v16  ;;  %v651_v21 = vrot.slane %v650_v19, 1 }
 0x191   : > { %641 = vst.msk [vmem:[%s292_s11] sm:$0x1] %vm640_vm6, %v639_v20  ;;  %v652_v22 = vadd.f32 %v651_v21, %v650_v19 }
 0x193   : > { %653 = vst.msk [vmem:[%s295_s14] sm:$0x1] %vm640_vm6, %v652_v22 }
 0x194 PF: > { %s18_s24 = sadd.s32 1, %s963_s24  }
 0x195   : > { %p15_p4 = scmp.ge.s32.totalorder %s18_s24, 4  }
 0x197   :  { %17 = sbr.rel (!%p15_p4) target bundleno = 1 (0x1), region = 96 }

// kernel: resnet_forward.9
= control target key start
LH: loop header
LB: loop body
LE: loop exit
PB: predicated region body
PF: predicated region fallthrough
CT: control target
= control target key end

     0   :  { %14 = vsyncpa [#allocation4], 0  ;;  %s1495_s0 = inlined_call_operand.vmem [shape: f32[2,16,64], index: 0, kind: input, shape index: {}]   ;;  %s1496_s1 = inlined_call_operand.vmem [shape: f32[1,64], index: 1, kind: input, shape index: {}]   ;;  %s1497_s2 = inlined_call_operand.vmem [shape: f32[1,64], index: 2, kind: input, shape index: {}]   ;;  %s1498_s3 = inlined_call_operand.vmem [shape: f32[3,72,64], index: 3, kind: input, shape index: {}]   ;;  %s1499_s4 = inlined_call_operand.vmem [shape: f32[1,64], index: 4, kind: input, shape index: {}]   ;;  %s1500_s5 = inlined_call_operand.vmem [shape: f32[2,16,64], index: 5, kind: input, shape index: {}]   ;;  %s1501_s6 = inlined_call_operand.vmem [shape: f32[2,16,64], index: 6, kind: output, shape index: {0}]   ;;  %s1502_s7 = inlined_call_operand.hbm [shape: f32[2,1,64], index: 7, kind: output, shape index: {1}]   ;;  %s1503_s8 = inlined_call_operand.hbm [shape: f32[2,1,64], index: 8, kind: output, shape index: {2}]  }
   0x1   :  { %16 = vsyncpa [#allocation4 + $0x1], 0 }
   0x2   :  { %17 = vsyncpa [#allocation6], 0 }
   0x3   :  { %19 = vsyncpa [#allocation6 + $0x1], 0  ;;  %s1248_s27 = smov 0   ;;  %s1250_s28 = smov 0  }
   0x4   :  { %s1252_s29 = smov 0   ;;  %s1254_s30 = smov 0  }
   0x5 LB: > { %s1269_s9 = sadd.s32 4294967295, %s1197_s30   ;;  %s865_s10 = sadd.s32 4294967294, %s1197_s30   ;;  %s1197_s30 = sphi %s1254_s30, %s1511_s30   ;;  %s1193_s29 = sphi %s1252_s29, %s1510_s29   ;;  %s1189_s28 = sphi %s1250_s28, %s1509_s28   ;;  %s1185_s27 = sphi %s1248_s27, %s1508_s27  }
   0x6   : > { %s1273_s11 = sadd.s32 1, %s1197_s30   ;;  %s194_s12 = sadd.s32 1, %s1193_s29 }
   0x7   : > { %s191_s13 = ssub.s32 %s1197_s30, %s1273_s11  ;;  %p204_p0 = scmp.ne.s32.totalorder %s1193_s29, %s1189_s28 }
   0x8   : > { %p192_p1 = scmp.eq.s32.totalorder %s191_s13, 0  ;;  %p205_p2 = scmp.eq.s32.totalorder %s1269_s9, 1 }
   0x9   : > { %p210_p3 = scmp.ne.s32.totalorder %s1189_s28, %s1185_s27  ;;  %p211_p4 = scmp.eq.s32.totalorder %s865_s10, 1 }
   0xa   : > { %s1284_s14 = scalar_select %p192_p1, %s1193_s29, %s194_s12  }
   0xb   : > { %p1286_p5 = por %p205_p2, %p204_p0  ;;  %p1290_p6 = por %p211_p4, %p210_p3 }
   0xc   : > { %p868_p7 = scmp.ge.s32.totalorder %s1197_s30, 1  ;;  %p283_p8 = scmp.lt.s32.totalorder %s1197_s30, 3 }
   0xe   : > { %p284_p9 = pnand %p868_p7, %p283_p8 }
   0xf   : > { %p330_p10 = scmp.lt.s32.totalorder (!%p284_p9), %s1269_s9, 1  ;;  %v389_v0 = vld [vmem:[%s1498_s3] sm:$0xff] (!%p284_p9)  ;;  %v390_v1 = vld [vmem:[%s1498_s3 + $0x8] sm:$0xff] (!%p284_p9)  ;;  %vm367_vm0 = vcmask (!%p284_p9), 581632   ;;  %vm369_vm1 = vcmask (!%p284_p9), 31744   ;;  %v878_v5 = vld [vmem:[%s1498_s3 + $0x50] sm:$0xff] (!%p284_p9) }
  0x10   : > { %287 = sbr.rel (%p284_p9) target bundleno = 451 (0x1c3), region = 44  ;;  %v877_v2 = vld [vmem:[%s1498_s3 + $0x48] sm:$0xff] (!%p284_p9)  ;;  %v875_v3 = vld [vmem:[%s1496_s1] ss:$0 sm:$0xff] (!%p284_p9)  ;;  %v1021_v4 = vpack.c.bf16 (!%p284_p9), %v390_v1, %v389_v0  ;;  %v391_v6 = vld [vmem:[%s1498_s3 + $0x10] sm:$0xff] (!%p284_p9)  ;;  %v1199_v8 = vmov (!%p284_p9), 0.0  }
  0x11   : > { %v392_v7 = vld [vmem:[%s1498_s3 + $0x18] sm:$0xff] (!%p284_p9)  ;;  %368 = vst.msk [vmem:[#allocation2] sm:$0x1] (!%p284_p9), %vm367_vm0, %v1199_v8  ;;  %372 = vst.msk [vmem:[#allocation2 + $0x11] sm:$0x1] (!%p284_p9), %vm367_vm0, %v1199_v8  ;;  %vm373_vm2 = vcmask (!%p284_p9), 589344   ;;  %v1005_v9 = vpack.c.bf16 (!%p284_p9), %v878_v5, %v877_v2 }
  0x12   : > { %370 = vst.msk [vmem:[#allocation2 + $0x1] sm:$0xff] (!%p284_p9), %vm369_vm1, %v1199_v8  ;;  %371 = vst.msk [vmem:[#allocation2 + $0x9] sm:$0xff] (!%p284_p9), %vm369_vm1, %v1199_v8  ;;  %v1025_v10 = vpack.c.bf16 (!%p284_p9), %v392_v7, %v391_v6  ;;  %v879_v11 = vld [vmem:[%s1498_s3 + $0x58] sm:$0xff] (!%p284_p9)  ;;  %v880_v12 = vld [vmem:[%s1498_s3 + $0x60] sm:$0xff] (!%p284_p9)  ;;  %1022 = vmatprep.subr.bf16.mxu0 (!%p284_p9), %v1021_v4  ;;  %s1200_s21 = smov (!%p284_p9), 4   ;;  %vm384_vm3 = vcmask (!%p284_p9), 556064  }
  0x13   : > { %374 = vst.msk [vmem:[#allocation2 + $0x1] sm:$0xff] (!%p284_p9), %vm373_vm2, %v1199_v8  ;;  %v393_v13 = vld [vmem:[%s1498_s3 + $0x20] sm:$0xff] (!%p284_p9)  ;;  %375 = vst.msk [vmem:[#allocation2 + $0x9] sm:$0xff] (!%p284_p9), %vm373_vm2, %v1199_v8  ;;  %v1009_v14 = vpack.c.bf16 (!%p284_p9), %v880_v12, %v879_v11  ;;  %v394_v15 = vld [vmem:[%s1498_s3 + $0x28] sm:$0xff] (!%p284_p9)  ;;  %1006 = vmatprep.subr.bf16.mxu1 (!%p284_p9), %v1005_v9  ;;  %1024 = vmatpush3.bf16.msra.mxu0 (!%p284_p9), %v1021_v4  ;;  %vm410_vm4 = vcmask (!%p284_p9), 588800   ;;  %vm681_vm5 = vcmask (!%p284_p9), 523264  }
  0x14   : > { %v881_v16 = vld [vmem:[%s1498_s3 + $0x68] sm:$0xff] (!%p284_p9)  ;;  %v882_v17 = vld [vmem:[%s1498_s3 + $0x70] sm:$0xff] (!%p284_p9)  ;;  %v876_v20 = vld [vmem:[%s1497_s2] ss:$0 sm:$0xff] (!%p284_p9)  ;;  %1008 = vmatpush3.bf16.msra.mxu1 (!%p284_p9), %v1005_v9  ;;  %1026 = vmatprep.subr.bf16.mxu0 (!%p284_p9), %v1025_v10  ;;  %v1029_v21 = vpack.c.bf16 (!%p284_p9), %v394_v15, %v393_v13  ;;  %s1409_s13 = sand.u32 (!%p284_p9), 1, %s1189_s28   ;;  %vm693_vm6 = vcmask (!%p284_p9), 516096  }
  0x15   : > { %1010 = vmatprep.subr.bf16.mxu1 (!%p284_p9), %v1009_v14  ;;  %v1013_v24 = vpack.c.bf16 (!%p284_p9), %v882_v17, %v881_v16  ;;  %v395_v25 = vld [vmem:[%s1498_s3 + $0x30] sm:$0xff] (!%p284_p9)  ;;  %v396_v26 = vld [vmem:[%s1498_s3 + $0x38] sm:$0xff] (!%p284_p9)  ;;  %v884_v28 = vld [vmem:[%s1498_s3 + $0x80] sm:$0xff] (!%p284_p9)  ;;  %s323_s17 = scalar_lea.vmem (!%p284_p9), [#allocation3], %s1409_s13  ;;  %s1504_s19 = scalar_lea.vmem (!%p284_p9), [#allocation5], %s1409_s13 }
  0x16   : > { %v883_v27 = vld [vmem:[%s1498_s3 + $0x78] sm:$0xff] (!%p284_p9)  ;;  %v1033_v31 = vpack.c.bf16 (!%p284_p9), %v396_v26, %v395_v25  ;;  %v397_v35 = vld [vmem:[%s1498_s3 + $0x40] sm:$0xff] (!%p284_p9)  ;;  %v890_v36 = vld [vmem:[%s1498_s3 + $0x90] sm:$0xff] (!%p284_p9)  ;;  %s732_s18 = sshll.u32 (!%p284_p9), %s323_s17, 4  ;;  %s745_s20 = sshll.u32 (!%p284_p9), %s1504_s19, 4  ;;  %s1421_s18 = int_to_ptr.vmem [resolvable:$true] %s732_s18  ;;  %s1429_s20 = int_to_ptr.vmem [resolvable:$true] %s745_s20 }
  0x17   : > { %s331_s23 = scalar_select %p330_p10, %s1269_s9, 1  ;;  %1028 = vmatpush3.bf16.msra.mxu0 %v1025_v10  ;;  %v1017_v33 = vpack.c.bf16 %v884_v28, %v883_v27  ;;  %v891_v37 = vld [vmem:[%s1498_s3 + $0x98] sm:$0xff]  ;;  %v885_v38 = vld [vmem:[%s1498_s3 + $0x88] sm:$0xff]  ;;  %v892_v42 = vld [vmem:[%s1498_s3 + $0xa0] sm:$0xff] }
  0x18   : > { %1012 = vmatpush3.bf16.msra.mxu1 %v1009_v14  ;;  %1030 = vmatprep.subr.bf16.mxu0 %v1029_v21  ;;  %v1037_v39 = vpack.c.bf16 %v891_v37, %v890_v36  ;;  %v893_v45 = vld [vmem:[%s1498_s3 + $0xa8] sm:$0xff]  ;;  %v894_v47 = vld [vmem:[%s1498_s3 + $0xb0] sm:$0xff]  ;;  %v895_v48 = vld [vmem:[%s1498_s3 + $0xb8] sm:$0xff]  ;;  %s713_s10 = scalar_lea.sflag [#allocation4], %s1409_s13 }
  0x19   : > { %s1328_s26 = sshll.u32 %s331_s23, 4  ;;  %1014 = vmatprep.subr.bf16.mxu1 %v1013_v24  ;;  %v1041_v46 = vpack.c.bf16 %v893_v45, %v892_v42  ;;  %v1045_v52 = vpack.c.bf16 %v895_v48, %v894_v47  ;;  %v896_v53 = vld [vmem:[%s1498_s3 + $0xc0] sm:$0xff]  ;;  %v897_v54 = vld [vmem:[%s1498_s3 + $0xc8] sm:$0xff]  ;;  %v898_v56 = vld [vmem:[%s1498_s3 + $0xd0] sm:$0xff] }
  0x1a   : > { %s334_s23 = scalar_lea.vmem %s1495_s0, %s1328_s26  ;;  %v1049_v55 = vpack.c.bf16 %v897_v54, %v896_v53  ;;  %v901_v61 = vld [vmem:[%s1499_s4] ss:$0 sm:$0xff]  ;;  %s344_s12 = scalar_lea.vmem %s1501_s6, %s1328_s26 }
  0x1b   : > { %v345_v18 = vld [vmem:[%s334_s23] sm:$0xff]  ;;  %v346_v19 = vld [vmem:[%s334_s23 + $0x8] sm:$0xff]  ;;  %1032 = vmatpush3.bf16.msra.mxu0 %v1029_v21  ;;  %s339_s23 = scalar_lea.vmem %s1500_s5, %s1328_s26  ;;  %s902_s26 = sshll.u32 %s1269_s9, 4 }
  0x1c   : > { %v354_v22 = vmul.f32 %v875_v3, %v345_v18  ;;  %v355_v23 = vmul.f32 %v875_v3, %v346_v19  ;;  %1016 = vmatpush3.bf16.msra.mxu1 %v1013_v24  ;;  %1034 = vmatprep.subr.bf16.mxu0 %v1033_v31  ;;  %v678_v0 = vld [vmem:[%s339_s23 + $0x8] sm:$0xff]  ;;  %v677_v3 = vld [vmem:[%s339_s23] sm:$0xff]  ;;  %s1419_s22 = scalar_lea.hbm %s1502_s7, %s902_s26  ;;  %s1427_s25 = scalar_lea.hbm %s1503_s8, %s902_s26 }
  0x1d   : > { %1018 = vmatprep.subr.bf16.mxu1 %v1017_v33 }
  0x1e   : > { %v363_v29 = vadd.f32 %v876_v20, %v354_v22  ;;  %v364_v30 = vadd.f32 %v876_v20, %v355_v23 }
  0x1f   : > { %1036 = vmatpush3.bf16.msra.mxu0 %v1033_v31 }
  0x20   : > { %v365_v32 = vmax.f32 %v363_v29, 0.0  ;;  %v366_v34 = vmax.f32 %v364_v30, 0.0  ;;  %1020 = vmatpush3.bf16.msra.mxu1 %v1017_v33  ;;  %979 = vmatprep.subr.mxu0 %v397_v35 }
  0x21   : > { %958 = vmatprep.subr.mxu1 %v885_v38 }
  0x22   : > { %378 = vrot.lane.b32.xlu0 %v365_v32, %s1200_s21 }
  0x23   : > { %980 = vmatpush3.msra.mxu0 %v397_v35 }
  0x24   : > { %959 = vmatpush3.msra.mxu1 %v885_v38  ;;  %1038 = vmatprep.subr.bf16.mxu0 %v1037_v39 }
  0x26   : > { %380 = vrot.lane.b32.xlu0 %v366_v34, %s1200_s21  ;;  %s1201_s21 = smov [#allocation3]  }
  0x27   : > { %s1107_s23 = sshll.u32 %s1201_s21, 4  ;;  %s1108_s23 = int_to_ptr.vmem [resolvable:$false] %s1107_s23 }
  0x28   : > { %s1109_s19 = scalar_lea.vmem %s1108_s23, 32  ;;  %p1110_p0 = scmp.lt.s32.totalorder %s1421_s18, %s1108_s23 }
  0x94   : > { %v379_v40 = vpop.permute.xlu0 %378 }
  0x95   : > { %385 = vst.msk [vmem:[#allocation2 + $0x1] sm:$0xff] %vm384_vm3, %v379_v40 }
  0x98   : > { %v381_v41 = vpop.permute.xlu0 %380 }
  0x99   : > { %386 = vst.msk [vmem:[#allocation2 + $0x9] sm:$0xff] %vm384_vm3, %v381_v41 }
  0x9c   : > { %v398_v43 = vld [vmem:[#allocation2 + $0x1] sm:$0xff] }
  0x9d   : > { %v387_v44 = vld [vmem:[#allocation2] sm:$0xff]  ;;  %960 = vmatprep.mubr.msk.f32.mxu1 %vm410_vm4, %v398_v43 }
  0x9e   : > { %981 = vmatprep.mubr.msk.f32.mxu0 %vm410_vm4, %v387_v44 }
  0xa0   : > { %v399_v49 = vld [vmem:[#allocation2 + $0x9] sm:$0xff] }
  0xa1   : > { %v388_v50 = vld [vmem:[#allocation2 + $0x8] sm:$0xff]  ;;  %961 = vmatmul.mubr.msk.f32.vlgmr.msra.gmra.mrb[0].mxu1 %vm410_vm4, %v399_v49 }
  0xa2   : > { %v573_v51 = vld [vmem:[#allocation2 + $0x2] sm:$0xff]  ;;  %982 = vmatmul.mubr.msk.f32.vlgmr.msra.gmra.mrb[0].mxu0 %vm410_vm4, %v388_v50  ;;  %v574_v57 = vld [vmem:[#allocation2 + $0xa] sm:$0xff] }
  0xa3   : > { %1040 = vmatpush3.bf16.msra.mxu0 %v1037_v39  ;;  %1002 = vmatprep.mubr.msk.f32.mxu0 %vm410_vm4, %v573_v51 }
  0xa4   : > { %1042 = vmatprep.subr.bf16.mxu0 %v1041_v46 }
  0xa7   : > { %1044 = vmatpush3.bf16.msra.mxu0 %v1041_v46 }
  0xa8   : > { %1046 = vmatprep.subr.bf16.mxu0 %v1045_v52 }
  0xab   : > { %1048 = vmatpush3.bf16.msra.mxu0 %v1045_v52 }
  0xac   : > { %1050 = vmatprep.subr.bf16.mxu0 %v1049_v55 }
  0xaf   : > { %1052 = vmatpush3.bf16.msra.mxu0 %v1049_v55 }
  0xb0   : > { %1000 = vmatprep.subr.mxu0 %v898_v56 }
  0xb3   : > { %1001 = vmatpush3.msra.mxu0 %v898_v56 }
  0xb4   : > { %1003 = vmatmul.mubr.msk.f32.vlgmr.msra.gmra.mrb[0].mxu0 %vm410_vm4, %v574_v57 }
 0x174   : > { %v962_v58 = vpop.f32.mrb[0].mxu1 }
 0x175   : > { %v483_v59 = vpop.f32.mrb[1].mxu1 }
 0x187   : > { %v1004_v60 = vpop.f32.mrb[0].mxu0 }
 0x188   : > { %v1053_v62 = vadd.f32 %v1004_v60, %v962_v58  ;;  %v657_v63 = vpop.f32.mrb[1].mxu0 }
 0x189   : > { %v1054_v1 = vadd.f32 %v657_v63, %v483_v59 }
 0x18a   : > { %v676_v2 = vadd.f32 %v1053_v62, %v901_v61 }
 0x18b   : > { %v675_v4 = vadd.f32 %v1054_v1, %v901_v61 }
 0x18c   : > { %v680_v5 = vadd.f32 %v678_v0, %v676_v2 }
 0x18d   : > { %v679_v6 = vadd.f32 %v677_v3, %v675_v4 }
 0x18e   : > { %683 = vst.msk [vmem:[%s344_s12 + $0x8] sm:$0xff] %vm681_vm5, %v680_v5  ;;  %v685_v7 = vsel %vm681_vm5, %v680_v5, 0.0  ;;  %v696_v8 = vmul.f32 %v680_v5, %v680_v5 }
 0x18f   : > { %682 = vst.msk [vmem:[%s344_s12] sm:$0xff] %vm681_vm5, %v679_v6  ;;  %v684_v9 = vsel %vm681_vm5, %v679_v6, 0.0  ;;  %v695_v10 = vmul.f32 %v679_v6, %v679_v6  ;;  %s1103_s12 = scalar_lea.vmem %s1421_s18, 16 }
 0x190   : > { %v698_v11 = vsel %vm681_vm5, %v696_v8, 0.0  ;;  %v686_v12 = vadd.f32 %v685_v7, %v684_v9  ;;  %p1104_p11 = scmp.ne.s32.totalorder %s1421_s18, %s1103_s12  ;;  %p1111_p1 = scmp.lt.s32.totalorder %s1109_s19, %s1103_s12 }
 0x191   : > { %v697_v13 = vsel %vm681_vm5, %v695_v10, 0.0 }
 0x192   : > { %v687_v14 = vrot.slane %v686_v12, 4  ;;  %v699_v15 = vadd.f32 %v698_v11, %v697_v13  ;;  %p1105_p12 = pnand %p1104_p11, %p1286_p5  ;;  %p1112_p2 = por %p1111_p1, %p1110_p0 }
 0x194   : > { %v688_v16 = vadd.f32 %v687_v14, %v686_v12  ;;  %v700_v17 = vrot.slane %v699_v15, 4  ;;  %p1106_p13 = pneg %p1105_p12 }
 0x196   : > { %v689_v18 = vrot.slane %v688_v16, 2  ;;  %v701_v19 = vadd.f32 %v700_v17, %v699_v15  ;;  %p1113_p3 = pnand %p1112_p2, %p1106_p13 }
 0x198   : > { %v690_v20 = vadd.f32 %v689_v18, %v688_v16  ;;  %v702_v21 = vrot.slane %v701_v19, 2 }
 0x19a   : > { %v691_v22 = vrot.slane %v690_v20, 1  ;;  %v703_v23 = vadd.f32 %v702_v21, %v701_v19 }
 0x19c   : > { %v692_v24 = vadd.f32 %v691_v22, %v690_v20  ;;  %v704_v25 = vrot.slane %v703_v23, 1 }
 0x19e   : > { %694 = vst.msk [vmem:[%s323_s17] sm:$0x1] %vm693_vm6, %v692_v24  ;;  %v705_v26 = vadd.f32 %v704_v25, %v703_v23 }
 0x19f   : > { %1116 = shalt.err (!%p1113_p3)
}
 0x1a0   : > { %s1117_s26 = scalar_lea.hbm %s1419_s22, 16  ;;  %s1121_s24 = scalar_lea.hbm %s1502_s7, 32 }
 0x1a1   : > { %p1118_p4 = scmp.ne.s32.totalorder %s1419_s22, %s1117_s26  ;;  %p1122_p9 = scmp.lt.u32.totalorder %s1419_s22, %s1502_s7 }
 0x1a2   : > { %p1123_p10 = scmp.lt.u32.totalorder %s1121_s24, %s1117_s26  ;;  %p1125_p12 = scmp.lt.u32.totalorder %s1117_s26, %s1419_s22 }
 0x1a3   : > { %p1119_p7 = pnand %p1118_p4, %p1286_p5 }
 0x1a4   : > { %p1124_p11 = por %p1123_p10, %p1122_p9 }
 0x1a5   : > { %p1120_p8 = pneg %p1119_p7 }
 0x1a6   : > { %p1126_p13 = por %p1125_p12, %p1124_p11 }
 0x1a8   : > { %p1127_p0 = pnand %p1126_p13, %p1120_p8 }
 0x1aa   : > { %1130 = shalt.err (!%p1127_p0)
}
 0x1ab   : > { %1057 = dma.vmem_to_hbm [thread:$0]  (%p1286_p5), %s1421_s18, 16, %s1419_s22, %s713_s10  }
 0x1ac   : > { %s1507_s19 = scalar_lea.vmem [#allocation5], %s1409_s13  ;;  %s717_s12 = scalar_lea.sflag [#allocation6], %s1409_s13 }
 0x1ad   : > { %706 = vst.msk [vmem:[%s1507_s19] sm:$0x1] %vm693_vm6, %v705_v26  ;;  %s1131_s17 = scalar_lea.vmem %s1429_s20, 16  ;;  %s1202_s26 = smov [#allocation5]  }
 0x1ae   : > { %p1132_p1 = scmp.ne.s32.totalorder %s1429_s20, %s1131_s17  ;;  %s1135_s9 = sshll.u32 %s1202_s26, 4  ;;  %s1136_s9 = int_to_ptr.vmem [resolvable:$false] %s1135_s9 }
 0x1af   : > { %s1137_s24 = scalar_lea.vmem %s1136_s9, 32  ;;  %p1138_p4 = scmp.lt.s32.totalorder %s1429_s20, %s1136_s9 }
 0x1b0   : > { %p1133_p2 = pnand %p1132_p1, %p1286_p5  ;;  %p1139_p7 = scmp.lt.s32.totalorder %s1137_s24, %s1131_s17 }
 0x1b2   : > { %p1134_p3 = pneg %p1133_p2  ;;  %p1140_p8 = por %p1139_p7, %p1138_p4 }
 0x1b4   : > { %p1141_p9 = pnand %p1140_p8, %p1134_p3 }
 0x1b6   : > { %1144 = shalt.err (!%p1141_p9)
}
 0x1b7   : > { %s1145_s13 = scalar_lea.hbm %s1427_s25, 16  ;;  %s1149_s10 = scalar_lea.hbm %s1503_s8, 32 }
 0x1b8   : > { %p1146_p10 = scmp.ne.s32.totalorder %s1427_s25, %s1145_s13  ;;  %p1150_p13 = scmp.lt.u32.totalorder %s1427_s25, %s1503_s8 }
 0x1b9   : > { %p1151_p0 = scmp.lt.u32.totalorder %s1149_s10, %s1145_s13  ;;  %p1153_p2 = scmp.lt.u32.totalorder %s1145_s13, %s1427_s25 }
 0x1ba   : > { %p1147_p11 = pnand %p1146_p10, %p1286_p5 }
 0x1bb   : > { %p1152_p1 = por %p1151_p0, %p1150_p13 }
 0x1bc   : > { %p1148_p12 = pneg %p1147_p11 }
 0x1bd   : > { %p1154_p3 = por %p1153_p2, %p1152_p1 }
 0x1bf   : > { %p1155_p4 = pnand %p1154_p3, %p1148_p12 }
 0x1c1   : > { %1158 = shalt.err (!%p1155_p4)
}
 0x1c2   : > { %1058 = dma.vmem_to_hbm [thread:$0]  (%p1286_p5), %s1429_s20, 16, %s1427_s25, %s717_s12  }
 0x1c3 PF: > { %p1068_p7 = scmp.ge.s32.totalorder %s1197_s30, 2  ;;  %s765_s19 = sand.u32 1, %s1185_s27  }
 0x1c4   : > { %s766_s17 = scalar_lea.sflag [#allocation4], %s765_s19 }
 0x1c5   : > { %p1062_p8 = pnand %p1068_p7, %p1290_p6 }
 0x1c7   : > { %1176 = dma.done.wait (!%p1062_p8), %s766_s17, 16  }
 0x1c8   : > { %1178 = vsyncadd (!%p1062_p8), %s766_s17, 4294967280  ;;  %s774_s26 = scalar_lea.sflag [#allocation6], %s765_s19 }
 0x1c9   : > { %1180 = dma.done.wait (!%p1062_p8), %s774_s26, 16  }
 0x1ca   : > { %1182 = vsyncadd (!%p1062_p8), %s774_s26, 4294967280  ;;  %p22_p5 = scmp.ge.s32.totalorder %s1273_s11, 4   ;;  %s1508_s27 = smov %s1189_s28 }
 0x1cb   : > { %s1509_s28 = smov %s1193_s29  ;;  %s1510_s29 = smov %s1284_s14 }
 0x1cc   : > { %s1511_s30 = smov %s1273_s11  ;;  %24 = sbr.rel (!%p22_p5) target bundleno = 5 (0x5), region = 113 }
 0x1d3   :  { %778 = vsyncpa [#allocation4], 1 }
 0x1d4   :  { %780 = vsyncpa [#allocation4 + $0x1], 1 }
 0x1d5   :  { %781 = vsyncpa [#allocation6], 1 }
 0x1d6   :  { %783 = vsyncpa [#allocation6 + $0x1], 1 }

// kernel: resnet_forward.7
= control target key start
LH: loop header
LB: loop body
LE: loop exit
PB: predicated region body
PF: predicated region fallthrough
CT: control target
= control target key end

     0   :  { %s1078_s27 = smov 0   ;;  %s1210_s0 = inlined_call_operand.vmem [shape: f32[2,16,64], index: 0, kind: input, shape index: {}]   ;;  %s1211_s1 = inlined_call_operand.vmem [shape: f32[1,64], index: 1, kind: input, shape index: {}]   ;;  %s1212_s2 = inlined_call_operand.vmem [shape: f32[1,64], index: 2, kind: input, shape index: {}]   ;;  %s1213_s3 = inlined_call_operand.vmem [shape: f32[3,72,64], index: 3, kind: input, shape index: {}]   ;;  %s1214_s4 = inlined_call_operand.vmem [shape: f32[1,64], index: 4, kind: input, shape index: {}]   ;;  %s1215_s5 = inlined_call_operand.vmem [shape: f32[2,16,64], index: 5, kind: input, shape index: {}]   ;;  %s1216_s6 = inlined_call_operand.vmem [shape: f32[2,16,64], index: 6, kind: output, shape index: {0}]   ;;  %s1217_s7 = inlined_call_operand.vmem [shape: f32[2,1,64], index: 7, kind: output, shape index: {1}]   ;;  %s1218_s8 = inlined_call_operand.vmem [shape: f32[2,1,64], index: 8, kind: output, shape index: {2}]  }
   0x1 LB: > { %s822_s28 = sadd.s32 4294967295, %s1029_s27   ;;  %p826_p0 = scmp.ge.s32.totalorder %s1029_s27, 1  ;;  %s1029_s27 = sphi %s1078_s27, %s19_s27  }
   0x2   : > { %p277_p1 = scmp.lt.s32.totalorder %s1029_s27, 3 }
   0x4   : > { %p278_p2 = pnand %p826_p0, %p277_p1 }
   0x5   : > { %p322_p3 = scmp.lt.s32.totalorder (!%p278_p2), %s822_s28, 1  ;;  %v387_v0 = vld [vmem:[%s1213_s3] sm:$0xff] (!%p278_p2)  ;;  %v388_v1 = vld [vmem:[%s1213_s3 + $0x8] sm:$0xff] (!%p278_p2)  ;;  %vm365_vm0 = vcmask (!%p278_p2), 581632   ;;  %vm367_vm1 = vcmask (!%p278_p2), 31744   ;;  %v836_v5 = vld [vmem:[%s1213_s3 + $0x50] sm:$0xff] (!%p278_p2) }
   0x6   : > { %281 = sbr.rel (%p278_p2) target bundleno = 406 (0x196), region = 44  ;;  %v835_v2 = vld [vmem:[%s1213_s3 + $0x48] sm:$0xff] (!%p278_p2)  ;;  %v833_v3 = vld [vmem:[%s1211_s1] ss:$0 sm:$0xff] (!%p278_p2)  ;;  %v977_v4 = vpack.c.bf16 (!%p278_p2), %v388_v1, %v387_v0  ;;  %v389_v6 = vld [vmem:[%s1213_s3 + $0x10] sm:$0xff] (!%p278_p2)  ;;  %v1031_v8 = vmov (!%p278_p2), 0.0  }
   0x7   : > { %v390_v7 = vld [vmem:[%s1213_s3 + $0x18] sm:$0xff] (!%p278_p2)  ;;  %366 = vst.msk [vmem:[#allocation2] sm:$0x1] (!%p278_p2), %vm365_vm0, %v1031_v8  ;;  %370 = vst.msk [vmem:[#allocation2 + $0x11] sm:$0x1] (!%p278_p2), %vm365_vm0, %v1031_v8  ;;  %vm371_vm2 = vcmask (!%p278_p2), 589344   ;;  %v961_v9 = vpack.c.bf16 (!%p278_p2), %v836_v5, %v835_v2 }
   0x8   : > { %368 = vst.msk [vmem:[#allocation2 + $0x1] sm:$0xff] (!%p278_p2), %vm367_vm1, %v1031_v8  ;;  %369 = vst.msk [vmem:[#allocation2 + $0x9] sm:$0xff] (!%p278_p2), %vm367_vm1, %v1031_v8  ;;  %v981_v10 = vpack.c.bf16 (!%p278_p2), %v390_v7, %v389_v6  ;;  %v837_v11 = vld [vmem:[%s1213_s3 + $0x58] sm:$0xff] (!%p278_p2)  ;;  %v838_v12 = vld [vmem:[%s1213_s3 + $0x60] sm:$0xff] (!%p278_p2)  ;;  %978 = vmatprep.subr.bf16.mxu0 (!%p278_p2), %v977_v4  ;;  %s1032_s30 = smov (!%p278_p2), 4   ;;  %vm382_vm3 = vcmask (!%p278_p2), 556064  }
   0x9   : > { %372 = vst.msk [vmem:[#allocation2 + $0x1] sm:$0xff] (!%p278_p2), %vm371_vm2, %v1031_v8  ;;  %v391_v13 = vld [vmem:[%s1213_s3 + $0x20] sm:$0xff] (!%p278_p2)  ;;  %373 = vst.msk [vmem:[#allocation2 + $0x9] sm:$0xff] (!%p278_p2), %vm371_vm2, %v1031_v8  ;;  %v965_v14 = vpack.c.bf16 (!%p278_p2), %v838_v12, %v837_v11  ;;  %v392_v15 = vld [vmem:[%s1213_s3 + $0x28] sm:$0xff] (!%p278_p2)  ;;  %962 = vmatprep.subr.bf16.mxu1 (!%p278_p2), %v961_v9  ;;  %980 = vmatpush3.bf16.msra.mxu0 (!%p278_p2), %v977_v4  ;;  %vm408_vm4 = vcmask (!%p278_p2), 588800   ;;  %vm679_vm5 = vcmask (!%p278_p2), 523264  }
   0xa   : > { %v839_v16 = vld [vmem:[%s1213_s3 + $0x68] sm:$0xff] (!%p278_p2)  ;;  %v840_v17 = vld [vmem:[%s1213_s3 + $0x70] sm:$0xff] (!%p278_p2)  ;;  %v834_v20 = vld [vmem:[%s1212_s2] ss:$0 sm:$0xff] (!%p278_p2)  ;;  %964 = vmatpush3.bf16.msra.mxu1 (!%p278_p2), %v961_v9  ;;  %982 = vmatprep.subr.bf16.mxu0 (!%p278_p2), %v981_v10  ;;  %v985_v21 = vpack.c.bf16 (!%p278_p2), %v392_v15, %v391_v13  ;;  %vm691_vm6 = vcmask (!%p278_p2), 516096  }
   0xb   : > { %966 = vmatprep.subr.bf16.mxu1 (!%p278_p2), %v965_v14  ;;  %v969_v24 = vpack.c.bf16 (!%p278_p2), %v840_v17, %v839_v16  ;;  %v393_v25 = vld [vmem:[%s1213_s3 + $0x30] sm:$0xff] (!%p278_p2)  ;;  %v394_v26 = vld [vmem:[%s1213_s3 + $0x38] sm:$0xff] (!%p278_p2)  ;;  %v842_v28 = vld [vmem:[%s1213_s3 + $0x80] sm:$0xff] (!%p278_p2) }
   0xc   : > { %v841_v27 = vld [vmem:[%s1213_s3 + $0x78] sm:$0xff] (!%p278_p2)  ;;  %v989_v31 = vpack.c.bf16 (!%p278_p2), %v394_v26, %v393_v25  ;;  %v395_v35 = vld [vmem:[%s1213_s3 + $0x40] sm:$0xff] (!%p278_p2)  ;;  %v848_v36 = vld [vmem:[%s1213_s3 + $0x90] sm:$0xff] (!%p278_p2) }
   0xd   : > { %s1220_s28 = smov (!%p322_p3, %s822_s28), 1  ;;  %984 = vmatpush3.bf16.msra.mxu0 %v981_v10  ;;  %v973_v33 = vpack.c.bf16 %v842_v28, %v841_v27  ;;  %v849_v37 = vld [vmem:[%s1213_s3 + $0x98] sm:$0xff]  ;;  %v843_v38 = vld [vmem:[%s1213_s3 + $0x88] sm:$0xff]  ;;  %v850_v42 = vld [vmem:[%s1213_s3 + $0xa0] sm:$0xff] }
   0xe   : > { %s1119_s29 = sshll.u32 %s1220_s28, 4  ;;  %968 = vmatpush3.bf16.msra.mxu1 %v965_v14  ;;  %986 = vmatprep.subr.bf16.mxu0 %v985_v21  ;;  %v993_v39 = vpack.c.bf16 %v849_v37, %v848_v36  ;;  %v851_v45 = vld [vmem:[%s1213_s3 + $0xa8] sm:$0xff]  ;;  %v852_v47 = vld [vmem:[%s1213_s3 + $0xb0] sm:$0xff]  ;;  %v853_v48 = vld [vmem:[%s1213_s3 + $0xb8] sm:$0xff]  ;;  %s339_s21 = scalar_lea.vmem %s1217_s7, %s1220_s28 }
   0xf   : > { %s326_s16 = scalar_lea.vmem %s1210_s0, %s1119_s29  ;;  %970 = vmatprep.subr.bf16.mxu1 %v969_v24  ;;  %v997_v46 = vpack.c.bf16 %v851_v45, %v850_v42  ;;  %v1001_v52 = vpack.c.bf16 %v853_v48, %v852_v47  ;;  %v854_v53 = vld [vmem:[%s1213_s3 + $0xc0] sm:$0xff]  ;;  %v855_v54 = vld [vmem:[%s1213_s3 + $0xc8] sm:$0xff]  ;;  %v856_v56 = vld [vmem:[%s1213_s3 + $0xd0] sm:$0xff]  ;;  %s331_s14 = scalar_lea.vmem %s1215_s5, %s1119_s29 }
  0x10   : > { %v343_v18 = vld [vmem:[%s326_s16] sm:$0xff]  ;;  %v344_v19 = vld [vmem:[%s326_s16 + $0x8] sm:$0xff]  ;;  %v1005_v55 = vpack.c.bf16 %v855_v54, %v854_v53  ;;  %s336_s19 = scalar_lea.vmem %s1216_s6, %s1119_s29  ;;  %s342_s24 = scalar_lea.vmem %s1218_s8, %s1220_s28 }
  0x11   : > { %v352_v22 = vmul.f32 %v833_v3, %v343_v18  ;;  %v353_v23 = vmul.f32 %v833_v3, %v344_v19  ;;  %988 = vmatpush3.bf16.msra.mxu0 %v985_v21  ;;  %v859_v61 = vld [vmem:[%s1214_s4] ss:$0 sm:$0xff]  ;;  %v676_v0 = vld [vmem:[%s331_s14 + $0x8] sm:$0xff] }
  0x12   : > { %972 = vmatpush3.bf16.msra.mxu1 %v969_v24  ;;  %990 = vmatprep.subr.bf16.mxu0 %v989_v31  ;;  %v675_v3 = vld [vmem:[%s331_s14] sm:$0xff] }
  0x13   : > { %v361_v29 = vadd.f32 %v834_v20, %v352_v22  ;;  %v362_v30 = vadd.f32 %v834_v20, %v353_v23  ;;  %974 = vmatprep.subr.bf16.mxu1 %v973_v33 }
  0x15   : > { %v363_v32 = vmax.f32 %v361_v29, 0.0  ;;  %v364_v34 = vmax.f32 %v362_v30, 0.0  ;;  %992 = vmatpush3.bf16.msra.mxu0 %v989_v31 }
  0x16   : > { %976 = vmatpush3.bf16.msra.mxu1 %v973_v33  ;;  %935 = vmatprep.subr.mxu0 %v395_v35 }
  0x17   : > { %376 = vrot.lane.b32.xlu0 %v363_v32, %s1032_s30  ;;  %914 = vmatprep.subr.mxu1 %v843_v38 }
  0x19   : > { %936 = vmatpush3.msra.mxu0 %v395_v35 }
  0x1a   : > { %915 = vmatpush3.msra.mxu1 %v843_v38  ;;  %994 = vmatprep.subr.bf16.mxu0 %v993_v39 }
  0x1b   : > { %378 = vrot.lane.b32.xlu0 %v364_v34, %s1032_s30 }
  0x89   : > { %v377_v40 = vpop.permute.xlu0 %376 }
  0x8a   : > { %383 = vst.msk [vmem:[#allocation2 + $0x1] sm:$0xff] %vm382_vm3, %v377_v40 }
  0x8d   : > { %v379_v41 = vpop.permute.xlu0 %378 }
  0x8e   : > { %384 = vst.msk [vmem:[#allocation2 + $0x9] sm:$0xff] %vm382_vm3, %v379_v41 }
  0x91   : > { %v396_v43 = vld [vmem:[#allocation2 + $0x1] sm:$0xff] }
  0x92   : > { %v385_v44 = vld [vmem:[#allocation2] sm:$0xff]  ;;  %916 = vmatprep.mubr.msk.f32.mxu1 %vm408_vm4, %v396_v43 }
  0x93   : > { %937 = vmatprep.mubr.msk.f32.mxu0 %vm408_vm4, %v385_v44 }
  0x95   : > { %v397_v49 = vld [vmem:[#allocation2 + $0x9] sm:$0xff] }
  0x96   : > { %v386_v50 = vld [vmem:[#allocation2 + $0x8] sm:$0xff]  ;;  %917 = vmatmul.mubr.msk.f32.vlgmr.msra.gmra.mrb[0].mxu1 %vm408_vm4, %v397_v49 }
  0x97   : > { %v571_v51 = vld [vmem:[#allocation2 + $0x2] sm:$0xff]  ;;  %938 = vmatmul.mubr.msk.f32.vlgmr.msra.gmra.mrb[0].mxu0 %vm408_vm4, %v386_v50  ;;  %v572_v57 = vld [vmem:[#allocation2 + $0xa] sm:$0xff] }
  0x98   : > { %996 = vmatpush3.bf16.msra.mxu0 %v993_v39  ;;  %958 = vmatprep.mubr.msk.f32.mxu0 %vm408_vm4, %v571_v51 }
  0x99   : > { %998 = vmatprep.subr.bf16.mxu0 %v997_v46 }
  0x9c   : > { %1000 = vmatpush3.bf16.msra.mxu0 %v997_v46 }
  0x9d   : > { %1002 = vmatprep.subr.bf16.mxu0 %v1001_v52 }
  0xa0   : > { %1004 = vmatpush3.bf16.msra.mxu0 %v1001_v52 }
  0xa1   : > { %1006 = vmatprep.subr.bf16.mxu0 %v1005_v55 }
  0xa4   : > { %1008 = vmatpush3.bf16.msra.mxu0 %v1005_v55 }
  0xa5   : > { %956 = vmatprep.subr.mxu0 %v856_v56 }
  0xa8   : > { %957 = vmatpush3.msra.mxu0 %v856_v56 }
  0xa9   : > { %959 = vmatmul.mubr.msk.f32.vlgmr.msra.gmra.mrb[0].mxu0 %vm408_vm4, %v572_v57 }
 0x169   : > { %v918_v58 = vpop.f32.mrb[0].mxu1 }
 0x16a   : > { %v481_v59 = vpop.f32.mrb[1].mxu1 }
 0x17c   : > { %v960_v60 = vpop.f32.mrb[0].mxu0 }
 0x17d   : > { %v1009_v62 = vadd.f32 %v960_v60, %v918_v58  ;;  %v655_v63 = vpop.f32.mrb[1].mxu0 }
 0x17e   : > { %v1010_v1 = vadd.f32 %v655_v63, %v481_v59 }
 0x17f   : > { %v674_v2 = vadd.f32 %v1009_v62, %v859_v61 }
 0x180   : > { %v673_v4 = vadd.f32 %v1010_v1, %v859_v61 }
 0x181   : > { %v678_v5 = vadd.f32 %v676_v0, %v674_v2 }
 0x182   : > { %v677_v6 = vadd.f32 %v675_v3, %v673_v4 }
 0x183   : > { %681 = vst.msk [vmem:[%s336_s19 + $0x8] sm:$0xff] %vm679_vm5, %v678_v5  ;;  %v683_v7 = vsel %vm679_vm5, %v678_v5, 0.0  ;;  %v694_v8 = vmul.f32 %v678_v5, %v678_v5 }
 0x184   : > { %680 = vst.msk [vmem:[%s336_s19] sm:$0xff] %vm679_vm5, %v677_v6  ;;  %v682_v9 = vsel %vm679_vm5, %v677_v6, 0.0  ;;  %v693_v10 = vmul.f32 %v677_v6, %v677_v6 }
 0x185   : > { %v696_v11 = vsel %vm679_vm5, %v694_v8, 0.0  ;;  %v684_v12 = vadd.f32 %v683_v7, %v682_v9 }
 0x186   : > { %v695_v13 = vsel %vm679_vm5, %v693_v10, 0.0 }
 0x187   : > { %v685_v14 = vrot.slane %v684_v12, 4  ;;  %v697_v15 = vadd.f32 %v696_v11, %v695_v13 }
 0x189   : > { %v686_v16 = vadd.f32 %v685_v14, %v684_v12  ;;  %v698_v17 = vrot.slane %v697_v15, 4 }
 0x18b   : > { %v687_v18 = vrot.slane %v686_v16, 2  ;;  %v699_v19 = vadd.f32 %v698_v17, %v697_v15 }
 0x18d   : > { %v688_v20 = vadd.f32 %v687_v18, %v686_v16  ;;  %v700_v21 = vrot.slane %v699_v19, 2 }
 0x18f   : > { %v689_v22 = vrot.slane %v688_v20, 1  ;;  %v701_v23 = vadd.f32 %v700_v21, %v699_v19 }
 0x191   : > { %v690_v24 = vadd.f32 %v689_v22, %v688_v20  ;;  %v702_v25 = vrot.slane %v701_v23, 1 }
 0x193   : > { %692 = vst.msk [vmem:[%s339_s21] sm:$0x1] %vm691_vm6, %v690_v24  ;;  %v703_v26 = vadd.f32 %v702_v25, %v701_v23 }
 0x195   : > { %704 = vst.msk [vmem:[%s342_s24] sm:$0x1] %vm691_vm6, %v703_v26 }
 0x196 PF: > { %s19_s27 = sadd.s32 1, %s1029_s27  }
 0x197   : > { %p16_p4 = scmp.ge.s32.totalorder %s19_s27, 4  }
 0x199   :  { %18 = sbr.rel (!%p16_p4) target bundleno = 1 (0x1), region = 103 }

</bundles_post_ra>
